<compile_context>
chip_gen: v7x
topology: tpu7x:2x2x1
jax: 0.10.0
libtpu: 0.0.40
codegen_flags: <defaults>
</compile_context>

<pallas_src>
import functools

import jax
import jax.numpy as jnp
from jax import lax
from jax.experimental import pallas as pl
from jax.experimental.pallas import tpu as pltpu


# ----------------------------------------------------------------------------
# Small helpers
# ----------------------------------------------------------------------------
@functools.lru_cache(maxsize=None)
def _vmem_limit_bytes():
    """Generation-aware scoped-VMEM cap: v5e/v6e have 128 MiB physical VMEM,
    v7x only 64 MiB per TensorCore — keep v7x at <=48 MiB."""
    default = 48 * 1024 * 1024
    try:
        cap = int(getattr(pltpu.get_tpu_info(), "vmem_capacity_bytes", 0))
    except Exception:
        return default
    if cap >= 100 * 1024 * 1024:          # v5e / v6e (128 MiB)
        return 96 * 1024 * 1024
    if cap > 0:                           # v7x (64 MiB) or smaller
        return min(default, (cap * 3) // 4)
    return default


def _largest_tile(n, cap, align=8):
    """Largest t <= cap dividing n with t % align == 0 (or t == n).
    Use align=16 for bf16-blocked row dims (packed sublanes)."""
    for t in range(min(cap, n), 0, -1):
        if n % t == 0 and (t % align == 0 or t == n):
            return t
    return n


def _round_up(x, m):
    return ((x + m - 1) // m) * m


def _const_spec(shape, index_map, single_buffer):
    """BlockSpec for grid-invariant operands; single-buffer (no double-buffer
    VMEM cost) when pipeline_mode is supported by this jax version."""
    if single_buffer:
        try:
            return pl.BlockSpec(shape, index_map, pipeline_mode=pl.Buffered(1))
        except TypeError:
            pass
    return pl.BlockSpec(shape, index_map)


def _call_with_fallback(build):
    """Try single-buffered weight specs; fall back to default buffering if the
    installed Pallas/Mosaic rejects pipeline_mode=Buffered(1)."""
    try:
        return build(True)
    except Exception:
        return build(False)


# ----------------------------------------------------------------------------
# Kernel 1: input_proj — 1x1 Conv2d(C_in -> D) == per-pixel matmul + bias,
# fused with the positional-encoding add (mem = proj + pos).
# x / pos / w arrive bf16 (half the streamed HBM bytes); f32 accumulation.
# ----------------------------------------------------------------------------
def _input_proj_kernel(x_ref, w_ref, b_ref, pos_ref, o_ref):
    acc = jnp.dot(x_ref[...], w_ref[...], preferred_element_type=jnp.float32)
    o_ref[...] = (acc + b_ref[...] + pos_ref[...]).astype(o_ref.dtype)


def input_proj_pallas(x_flat, w_bf16, b, pos_flat, *, tile_cap=1024):
    n, c_in = x_flat.shape
    d = w_bf16.shape[1]
    tile_m = _largest_tile(n, tile_cap, align=16)  # bf16 rows -> 16-aligned

    def build(single_buffer):
        return pl.pallas_call(
            _input_proj_kernel,
            grid=(n // tile_m,),
            in_specs=[
                pl.BlockSpec((tile_m, c_in), lambda i: (i, 0)),
                _const_spec((c_in, d), lambda i: (0, 0), single_buffer),
                _const_spec((1, d), lambda i: (0, 0), single_buffer),
                pl.BlockSpec((tile_m, d), lambda i: (i, 0)),
            ],
            out_specs=pl.BlockSpec((tile_m, d), lambda i: (i, 0)),
            out_shape=jax.ShapeDtypeStruct((n, d), jnp.bfloat16),
            compiler_params=pltpu.CompilerParams(
                dimension_semantics=("parallel",),
                vmem_limit_bytes=_vmem_limit_bytes()),
        )(x_flat, w_bf16, b, pos_flat)

    return _call_with_fallback(build)


# ----------------------------------------------------------------------------
# Kernel 2: fused decoder stack (all layers in one pallas_call).
# Memory stays resident in VMEM for all layers; K/V for ALL layers are
# projected with a single (S,D)x(D,2*L*D) matmul into a bf16 VMEM scratch;
# layers are statically unrolled, q carried in f32; only the final layer is
# written back (the original forward without aux_loss only consumes hs[-1]).
# ----------------------------------------------------------------------------
def _decoder_stack_kernel(q_ref, mem_ref, bias_ref, wq_ref, wkv_ref, wo_ref,
                          o_ref, kv_ref, *, num_layers):
    mem = mem_ref[0]                       # (S, D) bf16
    # Hoisted K/V projection for all layers in one MXU pass, kept bf16.
    kv_ref[...] = jnp.dot(mem, wkv_ref[...],
                          preferred_element_type=jnp.float32).astype(jnp.bfloat16)
    bias = bias_ref[0]                     # (1, S) additive padding-mask bias
    q = q_ref[0].astype(jnp.float32)       # (TQ, D) residual stream in f32
    d = q.shape[-1]
    for l in range(num_layers):            # static unroll over decoder layers
        # 1/sqrt(D) is folded into wq by the wrapper.
        qh = jnp.dot(q.astype(jnp.bfloat16), wq_ref[l],
                     preferred_element_type=jnp.float32)
        kh = kv_ref[:, (2 * l) * d:(2 * l + 1) * d]       # (S, D) bf16
        vh = kv_ref[:, (2 * l + 1) * d:(2 * l + 2) * d]   # (S, D) bf16
        # contraction on last dims of both operands -> no explicit K transpose
        scores = lax.dot_general(qh.astype(jnp.bfloat16), kh,
                                 (((1,), (1,)), ((), ())),
                                 preferred_element_type=jnp.float32) + bias
        m = jnp.max(scores, axis=-1, keepdims=True)
        p = jnp.exp(scores - m)
        p = p * pl.reciprocal(jnp.sum(p, axis=-1, keepdims=True), approx=True)
        attn = jnp.dot(p.astype(jnp.bfloat16), vh,
                       preferred_element_type=jnp.float32)
        q = jnp.dot(attn.astype(jnp.bfloat16), wo_ref[l],
                    preferred_element_type=jnp.float32) + q
    o_ref[0] = q.astype(o_ref.dtype)


def decoder_stack_pallas(q0, mem, mask_bias, wq_scaled, wkv, wo,
                         *, query_tile_cap=128):
    b, nq, d = q0.shape
    s = mem.shape[1]
    num_layers = wo.shape[0]
    tile_q = _largest_tile(nq, query_tile_cap, align=8)
    kernel = functools.partial(_decoder_stack_kernel, num_layers=num_layers)

    def build(single_buffer):
        return pl.pallas_call(
            kernel,
            # query axis is independent in this cross-attention stand-in -> a
            # second "parallel" axis keeps both v7x TensorCores busy at B=1.
            grid=(b, nq // tile_q),
            in_specs=[
                pl.BlockSpec((1, tile_q, d), lambda bi, qi: (bi, qi, 0)),
                pl.BlockSpec((1, s, d), lambda bi, qi: (bi, 0, 0)),
                pl.BlockSpec((1, 1, s), lambda bi, qi: (bi, 0, 0)),
                _const_spec((num_layers, d, d), lambda bi, qi: (0, 0, 0),
                            single_buffer),
                _const_spec((d, 2 * num_layers * d), lambda bi, qi: (0, 0),
                            single_buffer),
                _const_spec((num_layers, d, d), lambda bi, qi: (0, 0, 0),
                            single_buffer),
            ],
            out_specs=pl.BlockSpec((1, tile_q, d), lambda bi, qi: (bi, qi, 0)),
            out_shape=jax.ShapeDtypeStruct((b, nq, d), jnp.bfloat16),
            scratch_shapes=[pltpu.VMEM((s, 2 * num_layers * d), jnp.bfloat16)],
            compiler_params=pltpu.CompilerParams(
                dimension_semantics=("parallel", "parallel"),
                vmem_limit_bytes=_vmem_limit_bytes()),
        )(q0, mem, mask_bias, wq_scaled, wkv, wo)

    return _call_with_fallback(build)


# ----------------------------------------------------------------------------
# Kernel 3: prediction heads (last decoder layer only), flattened (B*Q, D)
# rows. class_embed and bbox MLP outputs are packed into ONE lane-dense
# 128-wide f32 buffer: cols [0, C) = logits, cols [C, C+4) = sigmoid(boxes).
# ----------------------------------------------------------------------------
def _head_kernel(hs_ref, wc_ref, bc_ref, w1_ref, b1_ref, w2_ref, b2_ref,
                 w3_ref, b3_ref, out_ref, *, num_cls):
    x = hs_ref[...]                               # (TR, D) bf16
    logits = (jnp.dot(x, wc_ref[...], preferred_element_type=jnp.float32)
              + bc_ref[...])
    h = jax.nn.relu(jnp.dot(x, w1_ref[...],
                            preferred_element_type=jnp.float32) + b1_ref[...])
    h = jax.nn.relu(jnp.dot(h.astype(jnp.bfloat16), w2_ref[...],
                            preferred_element_type=jnp.float32) + b2_ref[...])
    boxes = jax.nn.sigmoid(jnp.dot(h.astype(jnp.bfloat16), w3_ref[...],
                                   preferred_element_type=jnp.float32)
                           + b3_ref[...])
    col = lax.broadcasted_iota(jnp.int32, logits.shape, 1)
    out_ref[...] = jnp.where(col < num_cls, logits, boxes)


def heads_pallas(hs_rows, wc_p, bc_p, w1, b1, w2, b2, w3_p, b3_p, *,
                 num_cls, tile_cap=512):
    r, d = hs_rows.shape
    cpack = wc_p.shape[1]
    tile_r = _largest_tile(r, tile_cap, align=16)  # bf16 rows
    kernel = functools.partial(_head_kernel, num_cls=num_cls)

    def build(single_buffer):
        def cs(shape):
            return _const_spec(shape, lambda i: (0, 0), single_buffer)
        return pl.pallas_call(
            kernel,
            grid=(r // tile_r,),
            in_specs=[
                pl.BlockSpec((tile_r, d), lambda i: (i, 0)),
                cs((d, cpack)), cs((1, cpack)),
                cs((d, d)), cs((1, d)),
                cs((d, d)), cs((1, d)),
                cs((d, cpack)), cs((1, cpack)),
            ],
            out_specs=pl.BlockSpec((tile_r, cpack), lambda i: (i, 0)),
            out_shape=jax.ShapeDtypeStruct((r, cpack), jnp.float32),
            compiler_params=pltpu.CompilerParams(
                dimension_semantics=("parallel",),
                vmem_limit_bytes=_vmem_limit_bytes()),
        )(hs_rows, wc_p, bc_p, w1, b1, w2, b2, w3_p, b3_p)

    return _call_with_fallback(build)


# ----------------------------------------------------------------------------
# DETR forward (head portion), glue in plain JAX
# ----------------------------------------------------------------------------
def detr_forward(src, mask, pos, params, *, num_dec_layers):
    b, c_in, h, w = src.shape
    d = params["proj_w"].shape[1]
    nq = params["query_embed"].shape[0]
    hw = h * w
    bf16 = jnp.bfloat16

    # input_proj (1x1 conv as matmul) fused with positional-encoding add.
    # Streamed operands cast to bf16 here -> half the HBM traffic in-kernel.
    x_flat = jnp.transpose(src, (0, 2, 3, 1)).reshape(b * hw, c_in).astype(bf16)
    pos_flat = jnp.transpose(pos, (0, 2, 3, 1)).reshape(b * hw, d).astype(bf16)
    mem = input_proj_pallas(x_flat, params["proj_w"].astype(bf16),
                            params["proj_b"], pos_flat).reshape(b, hw, d)

    # padding mask -> additive bias (-1e9 on padded pixels)
    mask_bias = jnp.where(mask.reshape(b, 1, hw), -1e9, 0.0).astype(jnp.float32)

    # fused decoder stack: fold 1/sqrt(D) into wq, pack per-layer K/V weights
    # into one (D, 2*L*D) matrix so the kernel projects all K/V in one matmul.
    scale = 1.0 / (d ** 0.5)
    wq_scaled = (params["wq"] * scale).astype(bf16)
    wkv = jnp.concatenate(
        [jnp.concatenate([params["wk"][l], params["wv"][l]], axis=1)
         for l in range(num_dec_layers)], axis=1).astype(bf16)  # (D, 2*L*D)
    q0 = jnp.broadcast_to(params["query_embed"][None],
                          (b, nq, d)).astype(jnp.float32)
    hs_last = decoder_stack_pallas(q0, mem, mask_bias, wq_scaled, wkv,
                                   params["wo"].astype(bf16))   # (B, Q, D) bf16

    # prediction heads on the FINAL decoder layer only (matches forward
    # semantics with aux_loss=False); single packed lane-dense output.
    # TODO(synk): if aux_loss outputs are needed, emit all L layers instead.
    c1 = params["wc"].shape[1]
    cpack = max(128, _round_up(c1 + 4, 128))
    wc_p = jnp.zeros((d, cpack), jnp.float32).at[:, :c1].set(
        params["wc"]).astype(bf16)
    bc_p = jnp.zeros((1, cpack), jnp.float32).at[:, :c1].set(params["bc"])
    w3_p = jnp.zeros((d, cpack), jnp.float32).at[:, c1:c1 + 4].set(
        params["w3"]).astype(bf16)
    b3_p = jnp.zeros((1, cpack), jnp.float32).at[:, c1:c1 + 4].set(params["b3"])
    hs_rows = hs_last.reshape(b * nq, d)
    packed = heads_pallas(hs_rows, wc_p, bc_p,
                          params["w1"].astype(bf16), params["b1"],
                          params["w2"].astype(bf16), params["b2"],
                          w3_p, b3_p, num_cls=c1)
    pred_logits = packed[:, :c1].reshape(b, nq, c1)
    pred_boxes = packed[:, c1:c1 + 4].reshape(b, nq, 4)
    return {"pred_logits": pred_logits, "pred_boxes": pred_boxes}


# ----------------------------------------------------------------------------
# Pure-JAX f32 reference for correctness checking
# ----------------------------------------------------------------------------
def detr_reference(src, mask, pos, params, *, num_dec_layers):
    b, c_in, h, w = src.shape
    d = params["proj_w"].shape[1]
    nq = params["query_embed"].shape[0]
    x = jnp.transpose(src, (0, 2, 3, 1)).reshape(b, h * w, c_in)
    proj = x @ params["proj_w"] + params["proj_b"]
    pos_flat = jnp.transpose(pos, (0, 2, 3, 1)).reshape(b, h * w, d)
    mem = proj + pos_flat
    bias = jnp.where(mask.reshape(b, 1, h * w), -1e9, 0.0)
    q = jnp.broadcast_to(params["query_embed"][None], (b, nq, d))
    scale = 1.0 / (d ** 0.5)
    for l in range(num_dec_layers):
        qh = q @ params["wq"][l]
        kh = mem @ params["wk"][l]
        vh = mem @ params["wv"][l]
        scores = jnp.einsum("bqd,bsd->bqs", qh, kh) * scale + bias
        p = jax.nn.softmax(scores, axis=-1)
        q = jnp.einsum("bqs,bsd->bqd", p, vh) @ params["wo"][l] + q
    hs = q
    logits = hs @ params["wc"] + params["bc"]
    hbb = jax.nn.relu(hs @ params["w1"] + params["b1"])
    hbb = jax.nn.relu(hbb @ params["w2"] + params["b2"])
    boxes = jax.nn.sigmoid(hbb @ params["w3"] + params["b3"])
    return {"pred_logits": logits, "pred_boxes": boxes}


if __name__ == "__main__":
    # Small, deterministic configuration
    B, C_IN, H, W = 2, 4, 16, 16          # backbone feature map
    D = 32                                # transformer.d_model (hidden_dim)
    NUM_QUERIES = 8
    NUM_CLASSES = 7                       # -> class_embed out dim = 8
    NUM_DEC_LAYERS = 2

    key = jax.random.PRNGKey(0)
    ks = jax.random.split(key, 20)

    def rnd(k, shape, s=0.05):
        return jax.random.normal(k, shape, dtype=jnp.float32) * s

    params = {
        # input_proj: Conv2d(C_IN, D, kernel_size=1) -> (C_IN, D) matmul weight
        "proj_w": rnd(ks[0], (C_IN, D)),
        "proj_b": rnd(ks[1], (1, D)),
        # query embedding (num_queries, D)
        "query_embed": rnd(ks[2], (NUM_QUERIES, D)),
        # decoder stand-in weights, per layer (L, D, D)
        "wq": rnd(ks[3], (NUM_DEC_LAYERS, D, D)),
        "wk": rnd(ks[4], (NUM_DEC_LAYERS, D, D)),
        "wv": rnd(ks[5], (NUM_DEC_LAYERS, D, D)),
        "wo": rnd(ks[6], (NUM_DEC_LAYERS, D, D)),
        # class_embed: Linear(D, NUM_CLASSES + 1)
        "wc": rnd(ks[7], (D, NUM_CLASSES + 1)),
        "bc": rnd(ks[8], (1, NUM_CLASSES + 1)),
        # bbox_embed: MLP(D, D, 4, num_layers=3)
        "w1": rnd(ks[9], (D, D)), "b1": rnd(ks[10], (1, D)),
        "w2": rnd(ks[11], (D, D)), "b2": rnd(ks[12], (1, D)),
        "w3": rnd(ks[13], (D, 4)), "b3": rnd(ks[14], (1, 4)),
    }

    src = jax.random.normal(ks[15], (B, C_IN, H, W), dtype=jnp.float32)
    pos = rnd(ks[16], (B, D, H, W), s=0.1)
    # padding mask: True on padded pixels (pad right strip of image 1)
    mask = jnp.zeros((B, H, W), dtype=bool).at[1, :, W - 4:].set(True)

    out = detr_forward(src, mask, pos, params, num_dec_layers=NUM_DEC_LAYERS)
    jax.block_until_ready(out)

    ref = detr_reference(src, mask, pos, params, num_dec_layers=NUM_DEC_LAYERS)
    assert out["pred_logits"].shape == (B, NUM_QUERIES, NUM_CLASSES + 1)
    assert out["pred_boxes"].shape == (B, NUM_QUERIES, 4)
    # bf16 MXU operands + approx reciprocal -> loosened tolerance vs f32 ref
    assert jnp.allclose(out["pred_logits"], ref["pred_logits"],
                        atol=5e-3, rtol=5e-3), "pred_logits mismatch"
    assert jnp.allclose(out["pred_boxes"], ref["pred_boxes"],
                        atol=5e-3, rtol=5e-3), "pred_boxes mismatch"

    print("KERNEL_OK")
</pallas_src>

<mosaic_0001>
module attributes {stable_mosaic.version = 11 : i64} {
  func.func @_input_proj_kernel(%arg0: i32, %arg1: memref<512x4xbf16, #tpu.memory_space<vmem>>, %arg2: memref<4x32xbf16, #tpu.memory_space<vmem>>, %arg3: memref<1x32xf32, #tpu.memory_space<vmem>>, %arg4: memref<512x32xbf16, #tpu.memory_space<vmem>>, %arg5: memref<512x32xbf16, #tpu.memory_space<vmem>>) attributes {dimension_semantics = [#tpu.dimension_semantics<parallel>], iteration_bounds = array<i64: 1>, scalar_prefetch = 0 : i64, scratch_operands = 0 : i64, tpu.core_type = #tpu.core_type<tc>, window_params = [{transform_indices = @transform_0, window_bounds = array<i64: 512, 4>}, {pipeline_mode = #tpu.pipeline_mode<synchronous>, transform_indices = @transform_1, window_bounds = array<i64: 4, 32>}, {pipeline_mode = #tpu.pipeline_mode<synchronous>, transform_indices = @transform_2, window_bounds = array<i64: 1, 32>}, {transform_indices = @transform_3, window_bounds = array<i64: 512, 32>}, {transform_indices = @transform_4, window_bounds = array<i64: 512, 32>}]} {
    %c0 = arith.constant 0 : index
    %c0_0 = arith.constant 0 : index
    %0 = vector.load %arg1[%c0, %c0_0] : memref<512x4xbf16, #tpu.memory_space<vmem>>, vector<512x4xbf16>
    %c0_1 = arith.constant 0 : index
    %c0_2 = arith.constant 0 : index
    %1 = vector.load %arg2[%c0_1, %c0_2] : memref<4x32xbf16, #tpu.memory_space<vmem>>, vector<4x32xbf16>
    %cst = arith.constant dense<0.000000e+00> : vector<512x32xf32>
    %2 = tpu.matmul %0, %1, %cst {dimension_numbers = #tpu.dot_dimension_numbers<[1], [0], [0], [1], [0, 0, 1, 1], [], []>} : vector<512x4xbf16>, vector<4x32xbf16>, vector<512x32xf32> -> vector<512x32xf32>
    %c0_3 = arith.constant 0 : index
    %c0_4 = arith.constant 0 : index
    %3 = vector.load %arg3[%c0_3, %c0_4] : memref<1x32xf32, #tpu.memory_space<vmem>>, vector<1x32xf32>
    %4 = vector.broadcast %3 : vector<1x32xf32> to vector<512x32xf32>
    %5 = arith.addf %2, %4 : vector<512x32xf32>
    %c0_5 = arith.constant 0 : index
    %c0_6 = arith.constant 0 : index
    %6 = vector.load %arg4[%c0_5, %c0_6] : memref<512x32xbf16, #tpu.memory_space<vmem>>, vector<512x32xbf16>
    %7 = arith.extf %6 : vector<512x32xbf16> to vector<512x32xf32>
    %8 = arith.addf %5, %7 : vector<512x32xf32>
    %9 = arith.truncf %8 : vector<512x32xf32> to vector<512x32xbf16>
    %c0_7 = arith.constant 0 : index
    %c0_8 = arith.constant 0 : index
    %10 = vector.load %arg5[%c0_7, %c0_8] : memref<512x32xbf16, #tpu.memory_space<vmem>>, vector<512x32xbf16>
    tpu.vector_store %arg5[%c0_7, %c0_8], %9 {strides = array<i32>} : memref<512x32xbf16, #tpu.memory_space<vmem>>, vector<512x32xbf16>,
    return
  }
  func.func @transform_0(%arg0: i32) -> (i32, i32) {
    %c0_i32 = arith.constant 0 : i32
    %c0_i32_0 = arith.constant 0 : i32
    return %arg0, %c0_i32 : i32, i32
  }
  func.func @transform_1(%arg0: i32) -> (i32, i32) {
    %c0_i32 = arith.constant 0 : i32
    %c0_i32_0 = arith.constant 0 : i32
    %c0_i32_1 = arith.constant 0 : i32
    return %c0_i32, %c0_i32_0 : i32, i32
  }
  func.func @transform_2(%arg0: i32) -> (i32, i32) {
    %c0_i32 = arith.constant 0 : i32
    %c0_i32_0 = arith.constant 0 : i32
    %c0_i32_1 = arith.constant 0 : i32
    return %c0_i32, %c0_i32_0 : i32, i32
  }
  func.func @transform_3(%arg0: i32) -> (i32, i32) {
    %c0_i32 = arith.constant 0 : i32
    %c0_i32_0 = arith.constant 0 : i32
    return %arg0, %c0_i32 : i32, i32
  }
  func.func @transform_4(%arg0: i32) -> (i32, i32) {
    %c0_i32 = arith.constant 0 : i32
    %c0_i32_0 = arith.constant 0 : i32
    return %arg0, %c0_i32 : i32, i32
  }
}

module attributes {stable_mosaic.version = 11 : i64} {
  func.func @_input_proj_kernel(%arg0: i32, %arg1: memref<512x4xbf16, #tpu.memory_space<vmem>>, %arg2: memref<4x32xbf16, #tpu.memory_space<vmem>>, %arg3: memref<1x32xf32, #tpu.memory_space<vmem>>, %arg4: memref<512x32xbf16, #tpu.memory_space<vmem>>, %arg5: memref<512x32xbf16, #tpu.memory_space<vmem>>) attributes {dimension_semantics = [#tpu.dimension_semantics<parallel>], iteration_bounds = array<i64: 1>, scalar_prefetch = 0 : i64, scratch_operands = 0 : i64, tpu.core_type = #tpu.core_type<tc>, window_params = [{transform_indices = @transform_0, window_bounds = array<i64: 512, 4>}, {pipeline_mode = #tpu.pipeline_mode<synchronous>, transform_indices = @transform_1, window_bounds = array<i64: 4, 32>}, {pipeline_mode = #tpu.pipeline_mode<synchronous>, transform_indices = @transform_2, window_bounds = array<i64: 1, 32>}, {transform_indices = @transform_3, window_bounds = array<i64: 512, 32>}, {transform_indices = @transform_4, window_bounds = array<i64: 512, 32>}]} {
    %c0 = arith.constant 0 : index
    %c0_0 = arith.constant 0 : index
    %0 = vector.load %arg1[%c0, %c0_0] : memref<512x4xbf16, #tpu.memory_space<vmem>>, vector<512x4xbf16>
    %c0_1 = arith.constant 0 : index
    %c0_2 = arith.constant 0 : index
    %1 = vector.load %arg2[%c0_1, %c0_2] : memref<4x32xbf16, #tpu.memory_space<vmem>>, vector<4x32xbf16>
    %cst = arith.constant dense<0.000000e+00> : vector<512x32xf32>
    %2 = tpu.matmul %0, %1, %cst {dimension_numbers = #tpu.dot_dimension_numbers<[1], [0], [0], [1], [0, 0, 1, 1], [], []>} : vector<512x4xbf16>, vector<4x32xbf16>, vector<512x32xf32> -> vector<512x32xf32>
    %c0_3 = arith.constant 0 : index
    %c0_4 = arith.constant 0 : index
    %3 = vector.load %arg3[%c0_3, %c0_4] : memref<1x32xf32, #tpu.memory_space<vmem>>, vector<1x32xf32>
    %4 = vector.broadcast %3 : vector<1x32xf32> to vector<512x32xf32>
    %5 = arith.addf %2, %4 : vector<512x32xf32>
    %c0_5 = arith.constant 0 : index
    %c0_6 = arith.constant 0 : index
    %6 = vector.load %arg4[%c0_5, %c0_6] : memref<512x32xbf16, #tpu.memory_space<vmem>>, vector<512x32xbf16>
    %7 = arith.extf %6 : vector<512x32xbf16> to vector<512x32xf32>
    %8 = arith.addf %5, %7 : vector<512x32xf32>
    %9 = arith.truncf %8 : vector<512x32xf32> to vector<512x32xbf16>
    %c0_7 = arith.constant 0 : index
    %c0_8 = arith.constant 0 : index
    %10 = vector.load %arg5[%c0_7, %c0_8] : memref<512x32xbf16, #tpu.memory_space<vmem>>, vector<512x32xbf16>
    tpu.vector_store %arg5[%c0_7, %c0_8], %9 {strides = array<i32>} : memref<512x32xbf16, #tpu.memory_space<vmem>>, vector<512x32xbf16>,
    return
  }
  func.func @transform_0(%arg0: i32) -> (i32, i32) {
    %c0_i32 = arith.constant 0 : i32
    %c0_i32_0 = arith.constant 0 : i32
    return %arg0, %c0_i32 : i32, i32
  }
  func.func @transform_1(%arg0: i32) -> (i32, i32) {
    %c0_i32 = arith.constant 0 : i32
    %c0_i32_0 = arith.constant 0 : i32
    %c0_i32_1 = arith.constant 0 : i32
    return %c0_i32, %c0_i32_0 : i32, i32
  }
  func.func @transform_2(%arg0: i32) -> (i32, i32) {
    %c0_i32 = arith.constant 0 : i32
    %c0_i32_0 = arith.constant 0 : i32
    %c0_i32_1 = arith.constant 0 : i32
    return %c0_i32, %c0_i32_0 : i32, i32
  }
  func.func @transform_3(%arg0: i32) -> (i32, i32) {
    %c0_i32 = arith.constant 0 : i32
    %c0_i32_0 = arith.constant 0 : i32
    return %arg0, %c0_i32 : i32, i32
  }
  func.func @transform_4(%arg0: i32) -> (i32, i32) {
    %c0_i32 = arith.constant 0 : i32
    %c0_i32_0 = arith.constant 0 : i32
    return %arg0, %c0_i32 : i32, i32
  }
}

</mosaic_0001>

<bundles_post_ra>
// kernel: tpu_custom_call.1
= control target key start
LH: loop header
LB: loop body
LE: loop exit
PB: predicated region body
PF: predicated region fallthrough
CT: control target
= control target key end

     0   :  { %vm347_vm0 = vcmask 1041408   ;;  %vm250_vm1 = vcmask 31744   ;;  %vm1088_vm2 = vcmask 257024   ;;  %s2221_s1 = inlined_call_operand.vmem [shape: bf16[4,32], index: 1, kind: input, shape index: {}]   ;;  %s2222_s0 = inlined_call_operand.vmem [shape: bf16[512,4], index: 0, kind: input, shape index: {}]   ;;  %s2223_s3 = inlined_call_operand.vmem [shape: bf16[512,32], index: 3, kind: input, shape index: {}]   ;;  %s2224_s2 = inlined_call_operand.vmem [shape: f32[1,32], index: 2, kind: input, shape index: {}]   ;;  %s2225_s4 = inlined_call_operand.vmem [shape: bf16[512,32], index: 4, kind: output, shape index: {}]  }
   0x1   :  { %v82_v0 = vld [vmem:[%s2221_s1] sm:$0x3]  ;;  %v1614_v4 = vld [vmem:[%s2222_s0 + $0x8] sm:$0xff]   ;;  %v1616_v6 = vld [vmem:[%s2222_s0 + $0x10] sm:$0xff]  }
   0x2   :  { %1610 = vmatprep.subr.msk.bf16.mxu0 %vm347_vm0, %v82_v0  ;;  %1611 = vmatprep.subr.msk.bf16.mxu1 %vm347_vm0, %v82_v0  ;;  %v349_v1 = vsel %vm347_vm0, %v82_v0, 0  ;;  %v1612_v2 = vld [vmem:[%s2222_s0] sm:$0xff]   ;;  %v1615_v5 = vld [vmem:[%s2222_s0 + $0x88] sm:$0xff]   ;;  %v1617_v7 = vld [vmem:[%s2222_s0 + $0x90] sm:$0xff]  }
   0x3   :  { %1543 = vmatpush3.bf16.msra.mxu0 %v349_v1  ;;  %1609 = vmatpush3.bf16.msra.mxu1 %v349_v1  ;;  %v1613_v3 = vld [vmem:[%s2222_s0 + $0x80] sm:$0xff]   ;;  %v1618_v8 = vld [vmem:[%s2222_s0 + $0x18] sm:$0xff]   ;;  %v1622_v12 = vld [vmem:[%s2222_s0 + $0x28] sm:$0xff]  }
   0x4   :  { %1544 = vmatprep.mubr.msk.bf16.mxu0 %vm250_vm1, %v1612_v2  ;;  %1576 = vmatprep.mubr.msk.bf16.mxu1 %vm250_vm1, %v1613_v3  ;;  %v1619_v9 = vld [vmem:[%s2222_s0 + $0x98] sm:$0xff]   ;;  %v1620_v10 = vld [vmem:[%s2222_s0 + $0x20] sm:$0xff]   ;;  %v1623_v13 = vld [vmem:[%s2222_s0 + $0xa8] sm:$0xff]  }
   0x5   :  { %v1621_v11 = vld [vmem:[%s2222_s0 + $0xa0] sm:$0xff]   ;;  %v1624_v14 = vld [vmem:[%s2222_s0 + $0x30] sm:$0xff]   ;;  %v1626_v16 = vld [vmem:[%s2222_s0 + $0x38] sm:$0xff]  }
   0x6   :  { %1545 = vmatmul.mubr.msk.bf16.vlgmr.msra.gmra.mrb[0].mxu0 %vm250_vm1, %v1614_v4  ;;  %1577 = vmatmul.mubr.msk.bf16.vlgmr.msra.gmra.mrb[0].mxu1 %vm250_vm1, %v1615_v5  ;;  %v1625_v15 = vld [vmem:[%s2222_s0 + $0xb0] sm:$0xff]   ;;  %v1627_v17 = vld [vmem:[%s2222_s0 + $0xb8] sm:$0xff]   ;;  %v1628_v18 = vld [vmem:[%s2222_s0 + $0x40] sm:$0xff]  }
   0x7   :  { %1548 = vmatprep.mubr.msk.bf16.mxu0 %vm250_vm1, %v1616_v6  ;;  %1580 = vmatprep.mubr.msk.bf16.mxu1 %vm250_vm1, %v1617_v7  ;;  %v1629_v19 = vld [vmem:[%s2222_s0 + $0xc0] sm:$0xff]   ;;  %v1630_v20 = vld [vmem:[%s2222_s0 + $0x48] sm:$0xff]   ;;  %v1632_v22 = vld [vmem:[%s2222_s0 + $0x50] sm:$0xff]  }
   0x8   :  { %v1631_v21 = vld [vmem:[%s2222_s0 + $0xc8] sm:$0xff]   ;;  %v1633_v23 = vld [vmem:[%s2222_s0 + $0xd0] sm:$0xff]   ;;  %v1634_v24 = vld [vmem:[%s2222_s0 + $0x58] sm:$0xff]  }
   0x9   :  { %v1635_v25 = vld [vmem:[%s2222_s0 + $0xd8] sm:$0xff]   ;;  %v1636_v26 = vld [vmem:[%s2222_s0 + $0x60] sm:$0xff]   ;;  %v1638_v28 = vld [vmem:[%s2222_s0 + $0x68] sm:$0xff]  }
   0xa   :  { %v1637_v27 = vld [vmem:[%s2222_s0 + $0xe0] sm:$0xff]   ;;  %v1639_v29 = vld [vmem:[%s2222_s0 + $0xe8] sm:$0xff]   ;;  %v1640_v30 = vld [vmem:[%s2222_s0 + $0x70] sm:$0xff]  }
   0xb   :  { %v1641_v31 = vld [vmem:[%s2222_s0 + $0xf0] sm:$0xff]   ;;  %v1642_v32 = vld [vmem:[%s2222_s0 + $0x78] sm:$0xff]   ;;  %v1478_v34 = vld [vmem:[%s2223_s3 + $0x8] sm:$0xff]  }
   0xc   :  { %v1643_v33 = vld [vmem:[%s2222_s0 + $0xf8] sm:$0xff]   ;;  %v1494_v35 = vld [vmem:[%s2223_s3 + $0x88] sm:$0xff]   ;;  %v1351_v36 = vld [vmem:[%s2223_s3] sm:$0xff]   ;;  %v1356_v39 = vunpack.c.l.bf16 %v1478_v34  ;;  %v1357_v47 = vunpack.c.h.bf16 %v1478_v34 }
   0xd   :  { %v1812_v37 = vld [vmem:[%s2224_s2] ss:$0 sm:$0xff]  ;;  %v1420_v41 = vunpack.c.l.bf16 %v1494_v35  ;;  %v1352_v42 = vunpack.c.l.bf16 %v1351_v36  ;;  %v1421_v48 = vunpack.c.h.bf16 %v1494_v35  ;;  %v1353_v53 = vunpack.c.h.bf16 %v1351_v36  ;;  %v1480_v1 = vld [vmem:[%s2223_s3 + $0x18] sm:$0xff]   ;;  %v1479_v7 = vld [vmem:[%s2223_s3 + $0x10] sm:$0xff]  }
   0xe   :  { %1549 = vmatmul.mubr.msk.bf16.gmra.mrb[4].mxu0 %vm250_vm1, %v1618_v8  ;;  %1581 = vmatmul.mubr.msk.bf16.gmra.mrb[4].mxu1 %vm250_vm1, %v1619_v9  ;;  %v1493_v38 = vld [vmem:[%s2223_s3 + $0x80] sm:$0xff]   ;;  %v1496_v6 = vld [vmem:[%s2223_s3 + $0x98] sm:$0xff]  }
   0xf   :  { %1552 = vmatprep.mubr.msk.bf16.mxu0 %vm250_vm1, %v1620_v10  ;;  %1584 = vmatprep.mubr.msk.bf16.mxu1 %vm250_vm1, %v1621_v11  ;;  %v1416_v46 = vunpack.c.l.bf16 %v1493_v38  ;;  %v1417_v59 = vunpack.c.h.bf16 %v1493_v38 }
  0x16   :  { %1553 = vmatmul.mubr.msk.bf16.gmra.mrb[8].mxu0 %vm250_vm1, %v1622_v12  ;;  %1585 = vmatmul.mubr.msk.bf16.gmra.mrb[8].mxu1 %vm250_vm1, %v1623_v13  ;;  %v1495_v12 = vld [vmem:[%s2223_s3 + $0x90] sm:$0xff]  }
  0x17   :  { %1556 = vmatprep.mubr.msk.bf16.mxu0 %vm250_vm1, %v1624_v14  ;;  %1588 = vmatprep.mubr.msk.bf16.mxu1 %vm250_vm1, %v1625_v15 }
  0x1e   :  { %1557 = vmatmul.mubr.msk.bf16.gmra.mrb[12].mxu0 %vm250_vm1, %v1626_v16  ;;  %1589 = vmatmul.mubr.msk.bf16.gmra.mrb[12].mxu1 %vm250_vm1, %v1627_v17  ;;  %v1364_v16 = vunpack.c.l.bf16 %v1480_v1 }
  0x1f   :  { %1560 = vmatprep.mubr.msk.bf16.mxu0 %vm250_vm1, %v1628_v18  ;;  %1592 = vmatprep.mubr.msk.bf16.mxu1 %vm250_vm1, %v1629_v19 }
  0x26   :  { %1561 = vmatmul.mubr.msk.bf16.gmra.mrb[16].mxu0 %vm250_vm1, %v1630_v20  ;;  %1593 = vmatmul.mubr.msk.bf16.gmra.mrb[16].mxu1 %vm250_vm1, %v1631_v21  ;;  %v1428_v20 = vunpack.c.l.bf16 %v1496_v6  ;;  %v1360_v21 = vunpack.c.l.bf16 %v1479_v7 }
  0x27   :  { %1564 = vmatprep.mubr.msk.bf16.mxu0 %vm250_vm1, %v1632_v22  ;;  %1596 = vmatprep.mubr.msk.bf16.mxu1 %vm250_vm1, %v1633_v23 }
  0x2e   :  { %1565 = vmatmul.mubr.msk.bf16.gmra.mrb[20].mxu0 %vm250_vm1, %v1634_v24  ;;  %1597 = vmatmul.mubr.msk.bf16.gmra.mrb[20].mxu1 %vm250_vm1, %v1635_v25 }
  0x2f   :  { %1568 = vmatprep.mubr.msk.bf16.mxu0 %vm250_vm1, %v1636_v26  ;;  %1600 = vmatprep.mubr.msk.bf16.mxu1 %vm250_vm1, %v1637_v27  ;;  %v1424_v26 = vunpack.c.l.bf16 %v1495_v12  ;;  %v1365_v27 = vunpack.c.h.bf16 %v1480_v1 }
  0x36   :  { %1569 = vmatmul.mubr.msk.bf16.gmra.mrb[24].mxu0 %vm250_vm1, %v1638_v28  ;;  %1601 = vmatmul.mubr.msk.bf16.gmra.mrb[24].mxu1 %vm250_vm1, %v1639_v29 }
  0x37   :  { %1572 = vmatprep.mubr.msk.bf16.mxu0 %vm250_vm1, %v1640_v30  ;;  %1604 = vmatprep.mubr.msk.bf16.mxu1 %vm250_vm1, %v1641_v31 }
  0x3e   :  { %1573 = vmatmul.mubr.msk.bf16.gmra.mrb[28].mxu0 %vm250_vm1, %v1642_v32  ;;  %1605 = vmatmul.mubr.msk.bf16.gmra.mrb[28].mxu1 %vm250_vm1, %v1643_v33  ;;  %v1429_v32 = vunpack.c.h.bf16 %v1496_v6  ;;  %v1361_v33 = vunpack.c.h.bf16 %v1479_v7 }
  0xd9   :  { %v1546_v40 = vpop.f32.mrb[0].mxu0  ;;  %v1578_v44 = vpop.f32.mrb[0].mxu1 }
  0xda   :  { %v394_v43 = vadd.f32 %v1546_v40, %v1812_v37  ;;  %v385_v45 = vpop.f32.mrb[1].mxu0  ;;  %v522_v49 = vadd.f32 %v1578_v44, %v1812_v37  ;;  %v513_v51 = vpop.f32.mrb[1].mxu1  ;;  %v1425_v40 = vunpack.c.h.bf16 %v1495_v12 }
  0xdb   :  { %v386_v50 = vadd.f32 %v1812_v37, %v385_v45  ;;  %v1547_v52 = vpop.f32.mrb[2].mxu0  ;;  %v514_v55 = vadd.f32 %v1812_v37, %v513_v51  ;;  %v1579_v57 = vpop.f32.mrb[2].mxu1  ;;  %v1498_v51 = vld [vmem:[%s2223_s3 + $0xa8] sm:$0xff]  }
  0xdc   :  { %v770_v54 = vadd.f32 %v1356_v39, %v394_v43  ;;  %v397_v56 = vadd.f32 %v1547_v52, %v1812_v37  ;;  %v388_v58 = vpop.f32.mrb[3].mxu0  ;;  %v802_v60 = vadd.f32 %v1420_v41, %v522_v49  ;;  %v525_v62 = vadd.f32 %v1579_v57, %v1812_v37  ;;  %v516_v0 = vpop.f32.mrb[3].mxu1  ;;  %v1481_v52 = vld [vmem:[%s2223_s3 + $0x20] sm:$0xff]  }
  0xdd   :  { %v768_v61 = vadd.f32 %v1352_v42, %v386_v50  ;;  %v389_v63 = vadd.f32 %v1812_v37, %v388_v58  ;;  %v800_v3 = vadd.f32 %v1416_v46, %v514_v55  ;;  %v517_v5 = vadd.f32 %v1812_v37, %v516_v0  ;;  %v1482_v46 = vld [vmem:[%s2223_s3 + $0x28] sm:$0xff]   ;;  %v1497_v57 = vld [vmem:[%s2223_s3 + $0xa0] sm:$0xff]  }
  0xde   :  { %v1288_v2 = vpack.c.bf16 %v770_v54, %v770_v54  ;;  %v771_v4 = vadd.f32 %v1357_v47, %v397_v56  ;;  %v1320_v8 = vpack.c.bf16 %v802_v60, %v802_v60  ;;  %v803_v10 = vadd.f32 %v1421_v48, %v525_v62 }
  0xdf   :  { %v1286_v9 = vpack.c.bf16 %v768_v61, %v768_v61  ;;  %v769_v11 = vadd.f32 %v1353_v53, %v389_v63  ;;  %v1318_v13 = vpack.c.bf16 %v800_v3, %v800_v3  ;;  %v801_v15 = vadd.f32 %v1417_v59, %v517_v5 }
  0xe0   :  { %1091 = vst.msk [vmem:[%s2225_s4 + $0x8] sm:$0xf] %vm1088_vm2, %v1288_v2  ;;  %v1289_v14 = vpack.c.bf16 %v771_v4, %v771_v4  ;;  %1123 = vst.msk [vmem:[%s2225_s4 + $0x88] sm:$0xf] %vm1088_vm2, %v1320_v8  ;;  %v1321_v17 = vpack.c.bf16 %v803_v10, %v803_v10  ;;  %v1372_v61 = vunpack.c.l.bf16 %v1482_v46  ;;  %v1436_v1 = vunpack.c.l.bf16 %v1498_v51 }
  0xe1   :  { %1089 = vst.msk [vmem:[%s2225_s4] sm:$0xf] %vm1088_vm2, %v1286_v9  ;;  %v1287_v18 = vpack.c.bf16 %v769_v11, %v769_v11  ;;  %v1550_v19 = vpop.f32.mrb[4].mxu0  ;;  %1121 = vst.msk [vmem:[%s2225_s4 + $0x80] sm:$0xf] %vm1088_vm2, %v1318_v13  ;;  %v1319_v22 = vpack.c.bf16 %v801_v15, %v801_v15  ;;  %v1582_v24 = vpop.f32.mrb[4].mxu1  ;;  %v1368_v2 = vunpack.c.l.bf16 %v1481_v52  ;;  %v1432_v7 = vunpack.c.l.bf16 %v1497_v57 }
  0xe2   :  { %1092 = vst.msk [vmem:[%s2225_s4 + $0xc] sm:$0xf] %vm1088_vm2, %v1289_v14  ;;  %v410_v23 = vadd.f32 %v1550_v19, %v1812_v37  ;;  %v401_v25 = vpop.f32.mrb[5].mxu0  ;;  %1124 = vst.msk [vmem:[%s2225_s4 + $0x8c] sm:$0xf] %vm1088_vm2, %v1321_v17  ;;  %v538_v28 = vadd.f32 %v1582_v24, %v1812_v37  ;;  %v529_v30 = vpop.f32.mrb[5].mxu1  ;;  %v1373_v8 = vunpack.c.h.bf16 %v1482_v46  ;;  %v1437_v13 = vunpack.c.h.bf16 %v1498_v51 }
  0xe3   :  { %1090 = vst.msk [vmem:[%s2225_s4 + $0x4] sm:$0xf] %vm1088_vm2, %v1287_v18  ;;  %v402_v29 = vadd.f32 %v1812_v37, %v401_v25  ;;  %v1551_v31 = vpop.f32.mrb[6].mxu0  ;;  %1122 = vst.msk [vmem:[%s2225_s4 + $0x84] sm:$0xf] %vm1088_vm2, %v1319_v22  ;;  %v530_v35 = vadd.f32 %v1812_v37, %v529_v30  ;;  %v1583_v38 = vpop.f32.mrb[6].mxu1  ;;  %v1369_v14 = vunpack.c.h.bf16 %v1481_v52 }
  0xe4   :  { %v774_v34 = vadd.f32 %v1364_v16, %v410_v23  ;;  %v413_v36 = vadd.f32 %v1551_v31, %v1812_v37  ;;  %v404_v39 = vpop.f32.mrb[7].mxu0  ;;  %v806_v41 = vadd.f32 %v1428_v20, %v538_v28  ;;  %v541_v43 = vadd.f32 %v1583_v38, %v1812_v37  ;;  %v532_v45 = vpop.f32.mrb[7].mxu1  ;;  %v1500_v31 = vld [vmem:[%s2223_s3 + $0xb8] sm:$0xff]   ;;  %v1499_v38 = vld [vmem:[%s2223_s3 + $0xb0] sm:$0xff]  }
  0xe5   :  { %v772_v42 = vadd.f32 %v1360_v21, %v402_v29  ;;  %v405_v44 = vadd.f32 %v1812_v37, %v404_v39  ;;  %v804_v48 = vadd.f32 %v1424_v26, %v530_v35  ;;  %v533_v50 = vadd.f32 %v1812_v37, %v532_v45  ;;  %v1484_v26 = vld [vmem:[%s2223_s3 + $0x38] sm:$0xff]  }
  0xe6   :  { %v1292_v47 = vpack.c.bf16 %v774_v34, %v774_v34  ;;  %v775_v49 = vadd.f32 %v1365_v27, %v413_v36  ;;  %v1324_v53 = vpack.c.bf16 %v806_v41, %v806_v41  ;;  %v807_v55 = vadd.f32 %v1429_v32, %v541_v43  ;;  %v1483_v32 = vld [vmem:[%s2223_s3 + $0x30] sm:$0xff]  }
  0xe7   :  { %v1290_v54 = vpack.c.bf16 %v772_v42, %v772_v42  ;;  %v773_v56 = vadd.f32 %v1361_v33, %v405_v44  ;;  %v1322_v58 = vpack.c.bf16 %v804_v48, %v804_v48  ;;  %v805_v60 = vadd.f32 %v1425_v40, %v533_v50 }
  0xe8   :  { %1095 = vst.msk [vmem:[%s2225_s4 + $0x18] sm:$0xf] %vm1088_vm2, %v1292_v47  ;;  %v1293_v59 = vpack.c.bf16 %v775_v49, %v775_v49  ;;  %1127 = vst.msk [vmem:[%s2225_s4 + $0x98] sm:$0xf] %vm1088_vm2, %v1324_v53  ;;  %v1325_v62 = vpack.c.bf16 %v807_v55, %v807_v55  ;;  %v1433_v20 = vunpack.c.h.bf16 %v1497_v57  ;;  %v1380_v42 = vunpack.c.l.bf16 %v1484_v26 }
  0xe9   :  { %1093 = vst.msk [vmem:[%s2225_s4 + $0x10] sm:$0xf] %vm1088_vm2, %v1290_v54  ;;  %v1291_v63 = vpack.c.bf16 %v773_v56, %v773_v56  ;;  %v1554_v0 = vpop.f32.mrb[8].mxu0  ;;  %1125 = vst.msk [vmem:[%s2225_s4 + $0x90] sm:$0xf] %vm1088_vm2, %v1322_v58  ;;  %v1323_v3 = vpack.c.bf16 %v805_v60, %v805_v60  ;;  %v1586_v5 = vpop.f32.mrb[8].mxu1  ;;  %v1444_v46 = vunpack.c.l.bf16 %v1500_v31  ;;  %v1376_v47 = vunpack.c.l.bf16 %v1483_v32 }
  0xea   :  { %1096 = vst.msk [vmem:[%s2225_s4 + $0x1c] sm:$0xf] %vm1088_vm2, %v1293_v59  ;;  %v426_v4 = vadd.f32 %v1554_v0, %v1812_v37  ;;  %v417_v6 = vpop.f32.mrb[9].mxu0  ;;  %1128 = vst.msk [vmem:[%s2225_s4 + $0x9c] sm:$0xf] %vm1088_vm2, %v1325_v62  ;;  %v554_v9 = vadd.f32 %v1586_v5, %v1812_v37  ;;  %v545_v11 = vpop.f32.mrb[9].mxu1  ;;  %v1440_v52 = vunpack.c.l.bf16 %v1499_v38  ;;  %v1381_v53 = vunpack.c.h.bf16 %v1484_v26 }
  0xeb   :  { %1094 = vst.msk [vmem:[%s2225_s4 + $0x14] sm:$0xf] %vm1088_vm2, %v1291_v63  ;;  %v418_v10 = vadd.f32 %v1812_v37, %v417_v6  ;;  %v1555_v12 = vpop.f32.mrb[10].mxu0  ;;  %1126 = vst.msk [vmem:[%s2225_s4 + $0x94] sm:$0xf] %vm1088_vm2, %v1323_v3  ;;  %v546_v16 = vadd.f32 %v1812_v37, %v545_v11  ;;  %v1587_v18 = vpop.f32.mrb[10].mxu1  ;;  %v1445_v58 = vunpack.c.h.bf16 %v1500_v31  ;;  %v1377_v59 = vunpack.c.h.bf16 %v1483_v32 }
  0xec   :  { %v778_v15 = vadd.f32 %v1372_v61, %v426_v4  ;;  %v429_v17 = vadd.f32 %v1555_v12, %v1812_v37  ;;  %v420_v19 = vpop.f32.mrb[11].mxu0  ;;  %v810_v21 = vadd.f32 %v1436_v1, %v554_v9  ;;  %v557_v23 = vadd.f32 %v1587_v18, %v1812_v37  ;;  %v548_v25 = vpop.f32.mrb[11].mxu1  ;;  %v1502_v12 = vld [vmem:[%s2223_s3 + $0xc8] sm:$0xff]   ;;  %v1501_v18 = vld [vmem:[%s2223_s3 + $0xc0] sm:$0xff]  }
  0xed   :  { %v776_v22 = vadd.f32 %v1368_v2, %v418_v10  ;;  %v421_v24 = vadd.f32 %v1812_v37, %v420_v19  ;;  %v808_v28 = vadd.f32 %v1432_v7, %v546_v16  ;;  %v549_v30 = vadd.f32 %v1812_v37, %v548_v25  ;;  %v1486_v7 = vld [vmem:[%s2223_s3 + $0x48] sm:$0xff]  }
  0xee   :  { %v1296_v27 = vpack.c.bf16 %v778_v15, %v778_v15  ;;  %v779_v29 = vadd.f32 %v1373_v8, %v429_v17  ;;  %v1328_v33 = vpack.c.bf16 %v810_v21, %v810_v21  ;;  %v811_v35 = vadd.f32 %v1437_v13, %v557_v23  ;;  %v1485_v13 = vld [vmem:[%s2223_s3 + $0x40] sm:$0xff]  }
  0xef   :  { %v1294_v34 = vpack.c.bf16 %v776_v22, %v776_v22  ;;  %v777_v36 = vadd.f32 %v1369_v14, %v421_v24  ;;  %v1326_v39 = vpack.c.bf16 %v808_v28, %v808_v28  ;;  %v809_v41 = vadd.f32 %v1433_v20, %v549_v30 }
  0xf0   :  { %1099 = vst.msk [vmem:[%s2225_s4 + $0x28] sm:$0xf] %vm1088_vm2, %v1296_v27  ;;  %v1297_v40 = vpack.c.bf16 %v779_v29, %v779_v29  ;;  %1131 = vst.msk [vmem:[%s2225_s4 + $0xa8] sm:$0xf] %vm1088_vm2, %v1328_v33  ;;  %v1329_v43 = vpack.c.bf16 %v811_v35, %v811_v35  ;;  %v1441_v1 = vunpack.c.h.bf16 %v1499_v38  ;;  %v1388_v22 = vunpack.c.l.bf16 %v1486_v7 }
  0xf1   :  { %1097 = vst.msk [vmem:[%s2225_s4 + $0x20] sm:$0xf] %vm1088_vm2, %v1294_v34  ;;  %v1295_v44 = vpack.c.bf16 %v777_v36, %v777_v36  ;;  %v1558_v45 = vpop.f32.mrb[12].mxu0  ;;  %1129 = vst.msk [vmem:[%s2225_s4 + $0xa0] sm:$0xf] %vm1088_vm2, %v1326_v39  ;;  %v1327_v48 = vpack.c.bf16 %v809_v41, %v809_v41  ;;  %v1590_v50 = vpop.f32.mrb[12].mxu1  ;;  %v1452_v26 = vunpack.c.l.bf16 %v1502_v12  ;;  %v1384_v27 = vunpack.c.l.bf16 %v1485_v13 }
  0xf2   :  { %1100 = vst.msk [vmem:[%s2225_s4 + $0x2c] sm:$0xf] %vm1088_vm2, %v1297_v40  ;;  %v442_v49 = vadd.f32 %v1558_v45, %v1812_v37  ;;  %v433_v51 = vpop.f32.mrb[13].mxu0  ;;  %1132 = vst.msk [vmem:[%s2225_s4 + $0xac] sm:$0xf] %vm1088_vm2, %v1329_v43  ;;  %v570_v54 = vadd.f32 %v1590_v50, %v1812_v37  ;;  %v561_v56 = vpop.f32.mrb[13].mxu1  ;;  %v1448_v32 = vunpack.c.l.bf16 %v1501_v18  ;;  %v1389_v33 = vunpack.c.h.bf16 %v1486_v7 }
  0xf3   :  { %1098 = vst.msk [vmem:[%s2225_s4 + $0x24] sm:$0xf] %vm1088_vm2, %v1295_v44  ;;  %v434_v55 = vadd.f32 %v1812_v37, %v433_v51  ;;  %v1559_v57 = vpop.f32.mrb[14].mxu0  ;;  %1130 = vst.msk [vmem:[%s2225_s4 + $0xa4] sm:$0xf] %vm1088_vm2, %v1327_v48  ;;  %v562_v61 = vadd.f32 %v1812_v37, %v561_v56  ;;  %v1591_v63 = vpop.f32.mrb[14].mxu1  ;;  %v1453_v39 = vunpack.c.h.bf16 %v1502_v12  ;;  %v1385_v40 = vunpack.c.h.bf16 %v1485_v13 }
  0xf4   :  { %v782_v60 = vadd.f32 %v1380_v42, %v442_v49  ;;  %v445_v62 = vadd.f32 %v1559_v57, %v1812_v37  ;;  %v436_v0 = vpop.f32.mrb[15].mxu0  ;;  %v814_v2 = vadd.f32 %v1444_v46, %v570_v54  ;;  %v573_v4 = vadd.f32 %v1591_v63, %v1812_v37  ;;  %v564_v6 = vpop.f32.mrb[15].mxu1  ;;  %v1504_v57 = vld [vmem:[%s2223_s3 + $0xd8] sm:$0xff]   ;;  %v1503_v63 = vld [vmem:[%s2223_s3 + $0xd0] sm:$0xff]  }
  0xf5   :  { %v780_v3 = vadd.f32 %v1376_v47, %v434_v55  ;;  %v437_v5 = vadd.f32 %v1812_v37, %v436_v0  ;;  %v812_v9 = vadd.f32 %v1440_v52, %v562_v61  ;;  %v565_v11 = vadd.f32 %v1812_v37, %v564_v6  ;;  %v1488_v52 = vld [vmem:[%s2223_s3 + $0x58] sm:$0xff]  }
  0xf6   :  { %v1300_v8 = vpack.c.bf16 %v782_v60, %v782_v60  ;;  %v783_v10 = vadd.f32 %v1381_v53, %v445_v62  ;;  %v1332_v14 = vpack.c.bf16 %v814_v2, %v814_v2  ;;  %v815_v16 = vadd.f32 %v1445_v58, %v573_v4  ;;  %v1487_v58 = vld [vmem:[%s2223_s3 + $0x50] sm:$0xff]  }
  0xf7   :  { %v1298_v15 = vpack.c.bf16 %v780_v3, %v780_v3  ;;  %v781_v17 = vadd.f32 %v1377_v59, %v437_v5  ;;  %v1330_v19 = vpack.c.bf16 %v812_v9, %v812_v9  ;;  %v813_v21 = vadd.f32 %v1441_v1, %v565_v11 }
  0xf8   :  { %1103 = vst.msk [vmem:[%s2225_s4 + $0x38] sm:$0xf] %vm1088_vm2, %v1300_v8  ;;  %v1301_v20 = vpack.c.bf16 %v783_v10, %v783_v10  ;;  %1135 = vst.msk [vmem:[%s2225_s4 + $0xb8] sm:$0xf] %vm1088_vm2, %v1332_v14  ;;  %v1333_v23 = vpack.c.bf16 %v815_v16, %v815_v16  ;;  %v1449_v46 = vunpack.c.h.bf16 %v1501_v18  ;;  %v1396_v3 = vunpack.c.l.bf16 %v1488_v52 }
  0xf9   :  { %1101 = vst.msk [vmem:[%s2225_s4 + $0x30] sm:$0xf] %vm1088_vm2, %v1298_v15  ;;  %v1299_v24 = vpack.c.bf16 %v781_v17, %v781_v17  ;;  %v1562_v25 = vpop.f32.mrb[16].mxu0  ;;  %1133 = vst.msk [vmem:[%s2225_s4 + $0xb0] sm:$0xf] %vm1088_vm2, %v1330_v19  ;;  %v1331_v28 = vpack.c.bf16 %v813_v21, %v813_v21  ;;  %v1594_v30 = vpop.f32.mrb[16].mxu1  ;;  %v1460_v7 = vunpack.c.l.bf16 %v1504_v57  ;;  %v1392_v8 = vunpack.c.l.bf16 %v1487_v58 }
  0xfa   :  { %1104 = vst.msk [vmem:[%s2225_s4 + $0x3c] sm:$0xf] %vm1088_vm2, %v1301_v20  ;;  %v458_v29 = vadd.f32 %v1562_v25, %v1812_v37  ;;  %v449_v31 = vpop.f32.mrb[17].mxu0  ;;  %1136 = vst.msk [vmem:[%s2225_s4 + $0xbc] sm:$0xf] %vm1088_vm2, %v1333_v23  ;;  %v586_v34 = vadd.f32 %v1594_v30, %v1812_v37  ;;  %v577_v36 = vpop.f32.mrb[17].mxu1  ;;  %v1456_v13 = vunpack.c.l.bf16 %v1503_v63  ;;  %v1397_v14 = vunpack.c.h.bf16 %v1488_v52 }
  0xfb   :  { %1102 = vst.msk [vmem:[%s2225_s4 + $0x34] sm:$0xf] %vm1088_vm2, %v1299_v24  ;;  %v450_v35 = vadd.f32 %v1812_v37, %v449_v31  ;;  %v1563_v38 = vpop.f32.mrb[18].mxu0  ;;  %1134 = vst.msk [vmem:[%s2225_s4 + $0xb4] sm:$0xf] %vm1088_vm2, %v1331_v28  ;;  %v578_v42 = vadd.f32 %v1812_v37, %v577_v36  ;;  %v1595_v44 = vpop.f32.mrb[18].mxu1  ;;  %v1461_v19 = vunpack.c.h.bf16 %v1504_v57  ;;  %v1393_v20 = vunpack.c.h.bf16 %v1487_v58 }
  0xfc   :  { %v786_v41 = vadd.f32 %v1388_v22, %v458_v29  ;;  %v461_v43 = vadd.f32 %v1563_v38, %v1812_v37  ;;  %v452_v45 = vpop.f32.mrb[19].mxu0  ;;  %v818_v47 = vadd.f32 %v1452_v26, %v586_v34  ;;  %v589_v49 = vadd.f32 %v1595_v44, %v1812_v37  ;;  %v580_v51 = vpop.f32.mrb[19].mxu1  ;;  %v1506_v38 = vld [vmem:[%s2223_s3 + $0xe8] sm:$0xff]   ;;  %v1505_v44 = vld [vmem:[%s2223_s3 + $0xe0] sm:$0xff]  }
  0xfd   :  { %v784_v48 = vadd.f32 %v1384_v27, %v450_v35  ;;  %v453_v50 = vadd.f32 %v1812_v37, %v452_v45  ;;  %v816_v54 = vadd.f32 %v1448_v32, %v578_v42  ;;  %v581_v56 = vadd.f32 %v1812_v37, %v580_v51  ;;  %v1490_v32 = vld [vmem:[%s2223_s3 + $0x68] sm:$0xff]  }
  0xfe   :  { %v1304_v53 = vpack.c.bf16 %v786_v41, %v786_v41  ;;  %v787_v55 = vadd.f32 %v1389_v33, %v461_v43  ;;  %v1336_v59 = vpack.c.bf16 %v818_v47, %v818_v47  ;;  %v819_v61 = vadd.f32 %v1453_v39, %v589_v49  ;;  %v1489_v39 = vld [vmem:[%s2223_s3 + $0x60] sm:$0xff]  }
  0xff   :  { %v1302_v60 = vpack.c.bf16 %v784_v48, %v784_v48  ;;  %v785_v62 = vadd.f32 %v1385_v40, %v453_v50  ;;  %v1334_v0 = vpack.c.bf16 %v816_v54, %v816_v54  ;;  %v817_v2 = vadd.f32 %v1449_v46, %v581_v56 }
 0x100   :  { %1107 = vst.msk [vmem:[%s2225_s4 + $0x48] sm:$0xf] %vm1088_vm2, %v1304_v53  ;;  %v1305_v1 = vpack.c.bf16 %v787_v55, %v787_v55  ;;  %1139 = vst.msk [vmem:[%s2225_s4 + $0xc8] sm:$0xf] %vm1088_vm2, %v1336_v59  ;;  %v1337_v4 = vpack.c.bf16 %v819_v61, %v819_v61  ;;  %v1457_v26 = vunpack.c.h.bf16 %v1503_v63  ;;  %v1404_v48 = vunpack.c.l.bf16 %v1490_v32 }
 0x101   :  { %1105 = vst.msk [vmem:[%s2225_s4 + $0x40] sm:$0xf] %vm1088_vm2, %v1302_v60  ;;  %v1303_v5 = vpack.c.bf16 %v785_v62, %v785_v62  ;;  %v1566_v6 = vpop.f32.mrb[20].mxu0  ;;  %1137 = vst.msk [vmem:[%s2225_s4 + $0xc0] sm:$0xf] %vm1088_vm2, %v1334_v0  ;;  %v1335_v9 = vpack.c.bf16 %v817_v2, %v817_v2  ;;  %v1598_v11 = vpop.f32.mrb[20].mxu1  ;;  %v1468_v52 = vunpack.c.l.bf16 %v1506_v38  ;;  %v1400_v53 = vunpack.c.l.bf16 %v1489_v39 }
 0x102   :  { %1108 = vst.msk [vmem:[%s2225_s4 + $0x4c] sm:$0xf] %vm1088_vm2, %v1305_v1  ;;  %v474_v10 = vadd.f32 %v1566_v6, %v1812_v37  ;;  %v465_v12 = vpop.f32.mrb[21].mxu0  ;;  %1140 = vst.msk [vmem:[%s2225_s4 + $0xcc] sm:$0xf] %vm1088_vm2, %v1337_v4  ;;  %v602_v15 = vadd.f32 %v1598_v11, %v1812_v37  ;;  %v593_v17 = vpop.f32.mrb[21].mxu1  ;;  %v1464_v58 = vunpack.c.l.bf16 %v1505_v44  ;;  %v1405_v59 = vunpack.c.h.bf16 %v1490_v32 }
 0x103   :  { %1106 = vst.msk [vmem:[%s2225_s4 + $0x44] sm:$0xf] %vm1088_vm2, %v1303_v5  ;;  %v466_v16 = vadd.f32 %v1812_v37, %v465_v12  ;;  %v1567_v18 = vpop.f32.mrb[22].mxu0  ;;  %1138 = vst.msk [vmem:[%s2225_s4 + $0xc4] sm:$0xf] %vm1088_vm2, %v1335_v9  ;;  %v594_v22 = vadd.f32 %v1812_v37, %v593_v17  ;;  %v1599_v24 = vpop.f32.mrb[22].mxu1  ;;  %v1469_v0 = vunpack.c.h.bf16 %v1506_v38  ;;  %v1401_v1 = vunpack.c.h.bf16 %v1489_v39 }
 0x104   :  { %v790_v21 = vadd.f32 %v1396_v3, %v474_v10  ;;  %v477_v23 = vadd.f32 %v1567_v18, %v1812_v37  ;;  %v468_v25 = vpop.f32.mrb[23].mxu0  ;;  %v822_v27 = vadd.f32 %v1460_v7, %v602_v15  ;;  %v605_v29 = vadd.f32 %v1599_v24, %v1812_v37  ;;  %v596_v31 = vpop.f32.mrb[23].mxu1  ;;  %v1508_v18 = vld [vmem:[%s2223_s3 + $0xf8] sm:$0xff]   ;;  %v1507_v24 = vld [vmem:[%s2223_s3 + $0xf0] sm:$0xff]  }
 0x105   :  { %v788_v28 = vadd.f32 %v1392_v8, %v466_v16  ;;  %v469_v30 = vadd.f32 %v1812_v37, %v468_v25  ;;  %v820_v34 = vadd.f32 %v1456_v13, %v594_v22  ;;  %v597_v36 = vadd.f32 %v1812_v37, %v596_v31  ;;  %v1492_v13 = vld [vmem:[%s2223_s3 + $0x78] sm:$0xff]  }
 0x106   :  { %v1308_v33 = vpack.c.bf16 %v790_v21, %v790_v21  ;;  %v791_v35 = vadd.f32 %v1397_v14, %v477_v23  ;;  %v1340_v40 = vpack.c.bf16 %v822_v27, %v822_v27  ;;  %v823_v42 = vadd.f32 %v1461_v19, %v605_v29  ;;  %v1491_v19 = vld [vmem:[%s2223_s3 + $0x70] sm:$0xff]  }
 0x107   :  { %v1306_v41 = vpack.c.bf16 %v788_v28, %v788_v28  ;;  %v789_v43 = vadd.f32 %v1393_v20, %v469_v30  ;;  %v1338_v45 = vpack.c.bf16 %v820_v34, %v820_v34  ;;  %v821_v47 = vadd.f32 %v1457_v26, %v597_v36 }
 0x108   :  { %1111 = vst.msk [vmem:[%s2225_s4 + $0x58] sm:$0xf] %vm1088_vm2, %v1308_v33  ;;  %v1309_v46 = vpack.c.bf16 %v791_v35, %v791_v35  ;;  %1143 = vst.msk [vmem:[%s2225_s4 + $0xd8] sm:$0xf] %vm1088_vm2, %v1340_v40  ;;  %v1341_v49 = vpack.c.bf16 %v823_v42, %v823_v42  ;;  %v1465_v7 = vunpack.c.h.bf16 %v1505_v44  ;;  %v1412_v28 = vunpack.c.l.bf16 %v1492_v13 }
 0x109   :  { %1109 = vst.msk [vmem:[%s2225_s4 + $0x50] sm:$0xf] %vm1088_vm2, %v1306_v41  ;;  %v1307_v50 = vpack.c.bf16 %v789_v43, %v789_v43  ;;  %v1570_v51 = vpop.f32.mrb[24].mxu0  ;;  %1141 = vst.msk [vmem:[%s2225_s4 + $0xd0] sm:$0xf] %vm1088_vm2, %v1338_v45  ;;  %v1339_v54 = vpack.c.bf16 %v821_v47, %v821_v47  ;;  %v1602_v56 = vpop.f32.mrb[24].mxu1  ;;  %v1476_v32 = vunpack.c.l.bf16 %v1508_v18  ;;  %v1408_v33 = vunpack.c.l.bf16 %v1491_v19 }
 0x10a   :  { %1112 = vst.msk [vmem:[%s2225_s4 + $0x5c] sm:$0xf] %vm1088_vm2, %v1309_v46  ;;  %v490_v55 = vadd.f32 %v1570_v51, %v1812_v37  ;;  %v481_v57 = vpop.f32.mrb[25].mxu0  ;;  %1144 = vst.msk [vmem:[%s2225_s4 + $0xdc] sm:$0xf] %vm1088_vm2, %v1341_v49  ;;  %v618_v60 = vadd.f32 %v1602_v56, %v1812_v37  ;;  %v609_v62 = vpop.f32.mrb[25].mxu1  ;;  %v1472_v39 = vunpack.c.l.bf16 %v1507_v24  ;;  %v1413_v40 = vunpack.c.h.bf16 %v1492_v13 }
 0x10b   :  { %1110 = vst.msk [vmem:[%s2225_s4 + $0x54] sm:$0xf] %vm1088_vm2, %v1307_v50  ;;  %v482_v61 = vadd.f32 %v1812_v37, %v481_v57  ;;  %v1571_v63 = vpop.f32.mrb[26].mxu0  ;;  %1142 = vst.msk [vmem:[%s2225_s4 + $0xd4] sm:$0xf] %vm1088_vm2, %v1339_v54  ;;  %v610_v3 = vadd.f32 %v1812_v37, %v609_v62  ;;  %v1603_v5 = vpop.f32.mrb[26].mxu1  ;;  %v1477_v45 = vunpack.c.h.bf16 %v1508_v18  ;;  %v1409_v46 = vunpack.c.h.bf16 %v1491_v19 }
 0x10c   :  { %v794_v2 = vadd.f32 %v1404_v48, %v490_v55  ;;  %v493_v4 = vadd.f32 %v1571_v63, %v1812_v37  ;;  %v484_v6 = vpop.f32.mrb[27].mxu0  ;;  %v826_v8 = vadd.f32 %v1468_v52, %v618_v60  ;;  %v621_v10 = vadd.f32 %v1603_v5, %v1812_v37  ;;  %v612_v12 = vpop.f32.mrb[27].mxu1 }
 0x10d   :  { %v792_v9 = vadd.f32 %v1400_v53, %v482_v61  ;;  %v485_v11 = vadd.f32 %v1812_v37, %v484_v6  ;;  %v824_v15 = vadd.f32 %v1464_v58, %v610_v3  ;;  %v613_v17 = vadd.f32 %v1812_v37, %v612_v12 }
 0x10e   :  { %v1312_v14 = vpack.c.bf16 %v794_v2, %v794_v2  ;;  %v795_v16 = vadd.f32 %v1405_v59, %v493_v4  ;;  %v1344_v20 = vpack.c.bf16 %v826_v8, %v826_v8  ;;  %v827_v22 = vadd.f32 %v1469_v0, %v621_v10 }
 0x10f   :  { %v1310_v21 = vpack.c.bf16 %v792_v9, %v792_v9  ;;  %v793_v23 = vadd.f32 %v1401_v1, %v485_v11  ;;  %v1342_v25 = vpack.c.bf16 %v824_v15, %v824_v15  ;;  %v825_v27 = vadd.f32 %v1465_v7, %v613_v17 }
 0x110   :  { %1115 = vst.msk [vmem:[%s2225_s4 + $0x68] sm:$0xf] %vm1088_vm2, %v1312_v14  ;;  %v1313_v26 = vpack.c.bf16 %v795_v16, %v795_v16  ;;  %1147 = vst.msk [vmem:[%s2225_s4 + $0xe8] sm:$0xf] %vm1088_vm2, %v1344_v20  ;;  %v1345_v29 = vpack.c.bf16 %v827_v22, %v827_v22  ;;  %v1473_v52 = vunpack.c.h.bf16 %v1507_v24 }
 0x111   :  { %1113 = vst.msk [vmem:[%s2225_s4 + $0x60] sm:$0xf] %vm1088_vm2, %v1310_v21  ;;  %v1311_v30 = vpack.c.bf16 %v793_v23, %v793_v23  ;;  %v1574_v31 = vpop.f32.mrb[28].mxu0  ;;  %1145 = vst.msk [vmem:[%s2225_s4 + $0xe0] sm:$0xf] %vm1088_vm2, %v1342_v25  ;;  %v1343_v34 = vpack.c.bf16 %v825_v27, %v825_v27  ;;  %v1606_v36 = vpop.f32.mrb[28].mxu1 }
 0x112   :  { %1116 = vst.msk [vmem:[%s2225_s4 + $0x6c] sm:$0xf] %vm1088_vm2, %v1313_v26  ;;  %v506_v35 = vadd.f32 %v1574_v31, %v1812_v37  ;;  %v497_v38 = vpop.f32.mrb[29].mxu0  ;;  %1148 = vst.msk [vmem:[%s2225_s4 + $0xec] sm:$0xf] %vm1088_vm2, %v1345_v29  ;;  %v634_v41 = vadd.f32 %v1606_v36, %v1812_v37  ;;  %v625_v43 = vpop.f32.mrb[29].mxu1 }
 0x113   :  { %1114 = vst.msk [vmem:[%s2225_s4 + $0x64] sm:$0xf] %vm1088_vm2, %v1311_v30  ;;  %v498_v42 = vadd.f32 %v1812_v37, %v497_v38  ;;  %v1575_v44 = vpop.f32.mrb[30].mxu0  ;;  %1146 = vst.msk [vmem:[%s2225_s4 + $0xe4] sm:$0xf] %vm1088_vm2, %v1343_v34  ;;  %v626_v48 = vadd.f32 %v1812_v37, %v625_v43  ;;  %v1607_v50 = vpop.f32.mrb[30].mxu1 }
 0x114   :  { %v798_v47 = vadd.f32 %v1412_v28, %v506_v35  ;;  %v509_v49 = vadd.f32 %v1575_v44, %v1812_v37  ;;  %v500_v51 = vpop.f32.mrb[31].mxu0  ;;  %v830_v53 = vadd.f32 %v1476_v32, %v634_v41  ;;  %v637_v55 = vadd.f32 %v1607_v50, %v1812_v37  ;;  %v628_v57 = vpop.f32.mrb[31].mxu1 }
 0x115   :  { %v796_v54 = vadd.f32 %v1408_v33, %v498_v42  ;;  %v501_v56 = vadd.f32 %v1812_v37, %v500_v51  ;;  %v828_v59 = vadd.f32 %v1472_v39, %v626_v48  ;;  %v629_v61 = vadd.f32 %v1812_v37, %v628_v57 }
 0x116   :  { %v1316_v58 = vpack.c.bf16 %v798_v47, %v798_v47  ;;  %v799_v60 = vadd.f32 %v1413_v40, %v509_v49  ;;  %v1348_v62 = vpack.c.bf16 %v830_v53, %v830_v53  ;;  %v831_v0 = vadd.f32 %v1477_v45, %v637_v55 }
 0x117   :  { %v1314_v63 = vpack.c.bf16 %v796_v54, %v796_v54  ;;  %v797_v1 = vadd.f32 %v1409_v46, %v501_v56  ;;  %v1346_v2 = vpack.c.bf16 %v828_v59, %v828_v59  ;;  %v829_v4 = vadd.f32 %v1473_v52, %v629_v61 }
 0x118   :  { %1119 = vst.msk [vmem:[%s2225_s4 + $0x78] sm:$0xf] %vm1088_vm2, %v1316_v58  ;;  %v1317_v3 = vpack.c.bf16 %v799_v60, %v799_v60  ;;  %1151 = vst.msk [vmem:[%s2225_s4 + $0xf8] sm:$0xf] %vm1088_vm2, %v1348_v62  ;;  %v1349_v37 = vpack.c.bf16 %v831_v0, %v831_v0 }
 0x119   :  { %1117 = vst.msk [vmem:[%s2225_s4 + $0x70] sm:$0xf] %vm1088_vm2, %v1314_v63  ;;  %v1315_v5 = vpack.c.bf16 %v797_v1, %v797_v1  ;;  %1149 = vst.msk [vmem:[%s2225_s4 + $0xf0] sm:$0xf] %vm1088_vm2, %v1346_v2  ;;  %v1347_v6 = vpack.c.bf16 %v829_v4, %v829_v4 }
 0x11a   :  { %1120 = vst.msk [vmem:[%s2225_s4 + $0x7c] sm:$0xf] %vm1088_vm2, %v1317_v3  ;;  %1152 = vst.msk [vmem:[%s2225_s4 + $0xfc] sm:$0xf] %vm1088_vm2, %v1349_v37 }
 0x11b   :  { %1118 = vst.msk [vmem:[%s2225_s4 + $0x74] sm:$0xf] %vm1088_vm2, %v1315_v5  ;;  %1150 = vst.msk [vmem:[%s2225_s4 + $0xf4] sm:$0xf] %vm1088_vm2, %v1347_v6 }

// kernel: tpu_custom_call.1
= control target key start
LH: loop header
LB: loop body
LE: loop exit
PB: predicated region body
PF: predicated region fallthrough
CT: control target
= control target key end

     0   :  { %vm347_vm0 = vcmask 1041408   ;;  %vm250_vm1 = vcmask 31744   ;;  %vm1088_vm2 = vcmask 257024   ;;  %s2221_s1 = inlined_call_operand.vmem [shape: bf16[4,32], index: 1, kind: input, shape index: {}]   ;;  %s2222_s0 = inlined_call_operand.vmem [shape: bf16[512,4], index: 0, kind: input, shape index: {}]   ;;  %s2223_s3 = inlined_call_operand.vmem [shape: bf16[512,32], index: 3, kind: input, shape index: {}]   ;;  %s2224_s2 = inlined_call_operand.vmem [shape: f32[1,32], index: 2, kind: input, shape index: {}]   ;;  %s2225_s4 = inlined_call_operand.vmem [shape: bf16[512,32], index: 4, kind: output, shape index: {}]  }
   0x1   :  { %v82_v0 = vld [vmem:[%s2221_s1] sm:$0x3]  ;;  %v1614_v4 = vld [vmem:[%s2222_s0 + $0x8] sm:$0xff]   ;;  %v1616_v6 = vld [vmem:[%s2222_s0 + $0x10] sm:$0xff]  }
   0x2   :  { %1610 = vmatprep.subr.msk.bf16.mxu0 %vm347_vm0, %v82_v0  ;;  %1611 = vmatprep.subr.msk.bf16.mxu1 %vm347_vm0, %v82_v0  ;;  %v349_v1 = vsel %vm347_vm0, %v82_v0, 0  ;;  %v1612_v2 = vld [vmem:[%s2222_s0] sm:$0xff]   ;;  %v1615_v5 = vld [vmem:[%s2222_s0 + $0x88] sm:$0xff]   ;;  %v1617_v7 = vld [vmem:[%s2222_s0 + $0x90] sm:$0xff]  }
   0x3   :  { %1543 = vmatpush3.bf16.msra.mxu0 %v349_v1  ;;  %1609 = vmatpush3.bf16.msra.mxu1 %v349_v1  ;;  %v1613_v3 = vld [vmem:[%s2222_s0 + $0x80] sm:$0xff]   ;;  %v1618_v8 = vld [vmem:[%s2222_s0 + $0x18] sm:$0xff]   ;;  %v1622_v12 = vld [vmem:[%s2222_s0 + $0x28] sm:$0xff]  }
   0x4   :  { %1544 = vmatprep.mubr.msk.bf16.mxu0 %vm250_vm1, %v1612_v2  ;;  %1576 = vmatprep.mubr.msk.bf16.mxu1 %vm250_vm1, %v1613_v3  ;;  %v1619_v9 = vld [vmem:[%s2222_s0 + $0x98] sm:$0xff]   ;;  %v1620_v10 = vld [vmem:[%s2222_s0 + $0x20] sm:$0xff]   ;;  %v1623_v13 = vld [vmem:[%s2222_s0 + $0xa8] sm:$0xff]  }
   0x5   :  { %v1621_v11 = vld [vmem:[%s2222_s0 + $0xa0] sm:$0xff]   ;;  %v1624_v14 = vld [vmem:[%s2222_s0 + $0x30] sm:$0xff]   ;;  %v1626_v16 = vld [vmem:[%s2222_s0 + $0x38] sm:$0xff]  }
   0x6   :  { %1545 = vmatmul.mubr.msk.bf16.vlgmr.msra.gmra.mrb[0].mxu0 %vm250_vm1, %v1614_v4  ;;  %1577 = vmatmul.mubr.msk.bf16.vlgmr.msra.gmra.mrb[0].mxu1 %vm250_vm1, %v1615_v5  ;;  %v1625_v15 = vld [vmem:[%s2222_s0 + $0xb0] sm:$0xff]   ;;  %v1627_v17 = vld [vmem:[%s2222_s0 + $0xb8] sm:$0xff]   ;;  %v1628_v18 = vld [vmem:[%s2222_s0 + $0x40] sm:$0xff]  }
   0x7   :  { %1548 = vmatprep.mubr.msk.bf16.mxu0 %vm250_vm1, %v1616_v6  ;;  %1580 = vmatprep.mubr.msk.bf16.mxu1 %vm250_vm1, %v1617_v7  ;;  %v1629_v19 = vld [vmem:[%s2222_s0 + $0xc0] sm:$0xff]   ;;  %v1630_v20 = vld [vmem:[%s2222_s0 + $0x48] sm:$0xff]   ;;  %v1632_v22 = vld [vmem:[%s2222_s0 + $0x50] sm:$0xff]  }
   0x8   :  { %v1631_v21 = vld [vmem:[%s2222_s0 + $0xc8] sm:$0xff]   ;;  %v1633_v23 = vld [vmem:[%s2222_s0 + $0xd0] sm:$0xff]   ;;  %v1634_v24 = vld [vmem:[%s2222_s0 + $0x58] sm:$0xff]  }
   0x9   :  { %v1635_v25 = vld [vmem:[%s2222_s0 + $0xd8] sm:$0xff]   ;;  %v1636_v26 = vld [vmem:[%s2222_s0 + $0x60] sm:$0xff]   ;;  %v1638_v28 = vld [vmem:[%s2222_s0 + $0x68] sm:$0xff]  }
   0xa   :  { %v1637_v27 = vld [vmem:[%s2222_s0 + $0xe0] sm:$0xff]   ;;  %v1639_v29 = vld [vmem:[%s2222_s0 + $0xe8] sm:$0xff]   ;;  %v1640_v30 = vld [vmem:[%s2222_s0 + $0x70] sm:$0xff]  }
   0xb   :  { %v1641_v31 = vld [vmem:[%s2222_s0 + $0xf0] sm:$0xff]   ;;  %v1642_v32 = vld [vmem:[%s2222_s0 + $0x78] sm:$0xff]   ;;  %v1478_v34 = vld [vmem:[%s2223_s3 + $0x8] sm:$0xff]  }
   0xc   :  { %v1643_v33 = vld [vmem:[%s2222_s0 + $0xf8] sm:$0xff]   ;;  %v1494_v35 = vld [vmem:[%s2223_s3 + $0x88] sm:$0xff]   ;;  %v1351_v36 = vld [vmem:[%s2223_s3] sm:$0xff]   ;;  %v1356_v39 = vunpack.c.l.bf16 %v1478_v34  ;;  %v1357_v47 = vunpack.c.h.bf16 %v1478_v34 }
   0xd   :  { %v1812_v37 = vld [vmem:[%s2224_s2] ss:$0 sm:$0xff]  ;;  %v1420_v41 = vunpack.c.l.bf16 %v1494_v35  ;;  %v1352_v42 = vunpack.c.l.bf16 %v1351_v36  ;;  %v1421_v48 = vunpack.c.h.bf16 %v1494_v35  ;;  %v1353_v53 = vunpack.c.h.bf16 %v1351_v36  ;;  %v1480_v1 = vld [vmem:[%s2223_s3 + $0x18] sm:$0xff]   ;;  %v1479_v7 = vld [vmem:[%s2223_s3 + $0x10] sm:$0xff]  }
   0xe   :  { %1549 = vmatmul.mubr.msk.bf16.gmra.mrb[4].mxu0 %vm250_vm1, %v1618_v8  ;;  %1581 = vmatmul.mubr.msk.bf16.gmra.mrb[4].mxu1 %vm250_vm1, %v1619_v9  ;;  %v1493_v38 = vld [vmem:[%s2223_s3 + $0x80] sm:$0xff]   ;;  %v1496_v6 = vld [vmem:[%s2223_s3 + $0x98] sm:$0xff]  }
   0xf   :  { %1552 = vmatprep.mubr.msk.bf16.mxu0 %vm250_vm1, %v1620_v10  ;;  %1584 = vmatprep.mubr.msk.bf16.mxu1 %vm250_vm1, %v1621_v11  ;;  %v1416_v46 = vunpack.c.l.bf16 %v1493_v38  ;;  %v1417_v59 = vunpack.c.h.bf16 %v1493_v38 }
  0x16   :  { %1553 = vmatmul.mubr.msk.bf16.gmra.mrb[8].mxu0 %vm250_vm1, %v1622_v12  ;;  %1585 = vmatmul.mubr.msk.bf16.gmra.mrb[8].mxu1 %vm250_vm1, %v1623_v13  ;;  %v1495_v12 = vld [vmem:[%s2223_s3 + $0x90] sm:$0xff]  }
  0x17   :  { %1556 = vmatprep.mubr.msk.bf16.mxu0 %vm250_vm1, %v1624_v14  ;;  %1588 = vmatprep.mubr.msk.bf16.mxu1 %vm250_vm1, %v1625_v15 }
  0x1e   :  { %1557 = vmatmul.mubr.msk.bf16.gmra.mrb[12].mxu0 %vm250_vm1, %v1626_v16  ;;  %1589 = vmatmul.mubr.msk.bf16.gmra.mrb[12].mxu1 %vm250_vm1, %v1627_v17  ;;  %v1364_v16 = vunpack.c.l.bf16 %v1480_v1 }
  0x1f   :  { %1560 = vmatprep.mubr.msk.bf16.mxu0 %vm250_vm1, %v1628_v18  ;;  %1592 = vmatprep.mubr.msk.bf16.mxu1 %vm250_vm1, %v1629_v19 }
  0x26   :  { %1561 = vmatmul.mubr.msk.bf16.gmra.mrb[16].mxu0 %vm250_vm1, %v1630_v20  ;;  %1593 = vmatmul.mubr.msk.bf16.gmra.mrb[16].mxu1 %vm250_vm1, %v1631_v21  ;;  %v1428_v20 = vunpack.c.l.bf16 %v1496_v6  ;;  %v1360_v21 = vunpack.c.l.bf16 %v1479_v7 }
  0x27   :  { %1564 = vmatprep.mubr.msk.bf16.mxu0 %vm250_vm1, %v1632_v22  ;;  %1596 = vmatprep.mubr.msk.bf16.mxu1 %vm250_vm1, %v1633_v23 }
  0x2e   :  { %1565 = vmatmul.mubr.msk.bf16.gmra.mrb[20].mxu0 %vm250_vm1, %v1634_v24  ;;  %1597 = vmatmul.mubr.msk.bf16.gmra.mrb[20].mxu1 %vm250_vm1, %v1635_v25 }
  0x2f   :  { %1568 = vmatprep.mubr.msk.bf16.mxu0 %vm250_vm1, %v1636_v26  ;;  %1600 = vmatprep.mubr.msk.bf16.mxu1 %vm250_vm1, %v1637_v27  ;;  %v1424_v26 = vunpack.c.l.bf16 %v1495_v12  ;;  %v1365_v27 = vunpack.c.h.bf16 %v1480_v1 }
  0x36   :  { %1569 = vmatmul.mubr.msk.bf16.gmra.mrb[24].mxu0 %vm250_vm1, %v1638_v28  ;;  %1601 = vmatmul.mubr.msk.bf16.gmra.mrb[24].mxu1 %vm250_vm1, %v1639_v29 }
  0x37   :  { %1572 = vmatprep.mubr.msk.bf16.mxu0 %vm250_vm1, %v1640_v30  ;;  %1604 = vmatprep.mubr.msk.bf16.mxu1 %vm250_vm1, %v1641_v31 }
  0x3e   :  { %1573 = vmatmul.mubr.msk.bf16.gmra.mrb[28].mxu0 %vm250_vm1, %v1642_v32  ;;  %1605 = vmatmul.mubr.msk.bf16.gmra.mrb[28].mxu1 %vm250_vm1, %v1643_v33  ;;  %v1429_v32 = vunpack.c.h.bf16 %v1496_v6  ;;  %v1361_v33 = vunpack.c.h.bf16 %v1479_v7 }
  0xd9   :  { %v1546_v40 = vpop.f32.mrb[0].mxu0  ;;  %v1578_v44 = vpop.f32.mrb[0].mxu1 }
  0xda   :  { %v394_v43 = vadd.f32 %v1546_v40, %v1812_v37  ;;  %v385_v45 = vpop.f32.mrb[1].mxu0  ;;  %v522_v49 = vadd.f32 %v1578_v44, %v1812_v37  ;;  %v513_v51 = vpop.f32.mrb[1].mxu1  ;;  %v1425_v40 = vunpack.c.h.bf16 %v1495_v12 }
  0xdb   :  { %v386_v50 = vadd.f32 %v1812_v37, %v385_v45  ;;  %v1547_v52 = vpop.f32.mrb[2].mxu0  ;;  %v514_v55 = vadd.f32 %v1812_v37, %v513_v51  ;;  %v1579_v57 = vpop.f32.mrb[2].mxu1  ;;  %v1498_v51 = vld [vmem:[%s2223_s3 + $0xa8] sm:$0xff]  }
  0xdc   :  { %v770_v54 = vadd.f32 %v1356_v39, %v394_v43  ;;  %v397_v56 = vadd.f32 %v1547_v52, %v1812_v37  ;;  %v388_v58 = vpop.f32.mrb[3].mxu0  ;;  %v802_v60 = vadd.f32 %v1420_v41, %v522_v49  ;;  %v525_v62 = vadd.f32 %v1579_v57, %v1812_v37  ;;  %v516_v0 = vpop.f32.mrb[3].mxu1  ;;  %v1481_v52 = vld [vmem:[%s2223_s3 + $0x20] sm:$0xff]  }
  0xdd   :  { %v768_v61 = vadd.f32 %v1352_v42, %v386_v50  ;;  %v389_v63 = vadd.f32 %v1812_v37, %v388_v58  ;;  %v800_v3 = vadd.f32 %v1416_v46, %v514_v55  ;;  %v517_v5 = vadd.f32 %v1812_v37, %v516_v0  ;;  %v1482_v46 = vld [vmem:[%s2223_s3 + $0x28] sm:$0xff]   ;;  %v1497_v57 = vld [vmem:[%s2223_s3 + $0xa0] sm:$0xff]  }
  0xde   :  { %v1288_v2 = vpack.c.bf16 %v770_v54, %v770_v54  ;;  %v771_v4 = vadd.f32 %v1357_v47, %v397_v56  ;;  %v1320_v8 = vpack.c.bf16 %v802_v60, %v802_v60  ;;  %v803_v10 = vadd.f32 %v1421_v48, %v525_v62 }
  0xdf   :  { %v1286_v9 = vpack.c.bf16 %v768_v61, %v768_v61  ;;  %v769_v11 = vadd.f32 %v1353_v53, %v389_v63  ;;  %v1318_v13 = vpack.c.bf16 %v800_v3, %v800_v3  ;;  %v801_v15 = vadd.f32 %v1417_v59, %v517_v5 }
  0xe0   :  { %1091 = vst.msk [vmem:[%s2225_s4 + $0x8] sm:$0xf] %vm1088_vm2, %v1288_v2  ;;  %v1289_v14 = vpack.c.bf16 %v771_v4, %v771_v4  ;;  %1123 = vst.msk [vmem:[%s2225_s4 + $0x88] sm:$0xf] %vm1088_vm2, %v1320_v8  ;;  %v1321_v17 = vpack.c.bf16 %v803_v10, %v803_v10  ;;  %v1372_v61 = vunpack.c.l.bf16 %v1482_v46  ;;  %v1436_v1 = vunpack.c.l.bf16 %v1498_v51 }
  0xe1   :  { %1089 = vst.msk [vmem:[%s2225_s4] sm:$0xf] %vm1088_vm2, %v1286_v9  ;;  %v1287_v18 = vpack.c.bf16 %v769_v11, %v769_v11  ;;  %v1550_v19 = vpop.f32.mrb[4].mxu0  ;;  %1121 = vst.msk [vmem:[%s2225_s4 + $0x80] sm:$0xf] %vm1088_vm2, %v1318_v13  ;;  %v1319_v22 = vpack.c.bf16 %v801_v15, %v801_v15  ;;  %v1582_v24 = vpop.f32.mrb[4].mxu1  ;;  %v1368_v2 = vunpack.c.l.bf16 %v1481_v52  ;;  %v1432_v7 = vunpack.c.l.bf16 %v1497_v57 }
  0xe2   :  { %1092 = vst.msk [vmem:[%s2225_s4 + $0xc] sm:$0xf] %vm1088_vm2, %v1289_v14  ;;  %v410_v23 = vadd.f32 %v1550_v19, %v1812_v37  ;;  %v401_v25 = vpop.f32.mrb[5].mxu0  ;;  %1124 = vst.msk [vmem:[%s2225_s4 + $0x8c] sm:$0xf] %vm1088_vm2, %v1321_v17  ;;  %v538_v28 = vadd.f32 %v1582_v24, %v1812_v37  ;;  %v529_v30 = vpop.f32.mrb[5].mxu1  ;;  %v1373_v8 = vunpack.c.h.bf16 %v1482_v46  ;;  %v1437_v13 = vunpack.c.h.bf16 %v1498_v51 }
  0xe3   :  { %1090 = vst.msk [vmem:[%s2225_s4 + $0x4] sm:$0xf] %vm1088_vm2, %v1287_v18  ;;  %v402_v29 = vadd.f32 %v1812_v37, %v401_v25  ;;  %v1551_v31 = vpop.f32.mrb[6].mxu0  ;;  %1122 = vst.msk [vmem:[%s2225_s4 + $0x84] sm:$0xf] %vm1088_vm2, %v1319_v22  ;;  %v530_v35 = vadd.f32 %v1812_v37, %v529_v30  ;;  %v1583_v38 = vpop.f32.mrb[6].mxu1  ;;  %v1369_v14 = vunpack.c.h.bf16 %v1481_v52 }
  0xe4   :  { %v774_v34 = vadd.f32 %v1364_v16, %v410_v23  ;;  %v413_v36 = vadd.f32 %v1551_v31, %v1812_v37  ;;  %v404_v39 = vpop.f32.mrb[7].mxu0  ;;  %v806_v41 = vadd.f32 %v1428_v20, %v538_v28  ;;  %v541_v43 = vadd.f32 %v1583_v38, %v1812_v37  ;;  %v532_v45 = vpop.f32.mrb[7].mxu1  ;;  %v1500_v31 = vld [vmem:[%s2223_s3 + $0xb8] sm:$0xff]   ;;  %v1499_v38 = vld [vmem:[%s2223_s3 + $0xb0] sm:$0xff]  }
  0xe5   :  { %v772_v42 = vadd.f32 %v1360_v21, %v402_v29  ;;  %v405_v44 = vadd.f32 %v1812_v37, %v404_v39  ;;  %v804_v48 = vadd.f32 %v1424_v26, %v530_v35  ;;  %v533_v50 = vadd.f32 %v1812_v37, %v532_v45  ;;  %v1484_v26 = vld [vmem:[%s2223_s3 + $0x38] sm:$0xff]  }
  0xe6   :  { %v1292_v47 = vpack.c.bf16 %v774_v34, %v774_v34  ;;  %v775_v49 = vadd.f32 %v1365_v27, %v413_v36  ;;  %v1324_v53 = vpack.c.bf16 %v806_v41, %v806_v41  ;;  %v807_v55 = vadd.f32 %v1429_v32, %v541_v43  ;;  %v1483_v32 = vld [vmem:[%s2223_s3 + $0x30] sm:$0xff]  }
  0xe7   :  { %v1290_v54 = vpack.c.bf16 %v772_v42, %v772_v42  ;;  %v773_v56 = vadd.f32 %v1361_v33, %v405_v44  ;;  %v1322_v58 = vpack.c.bf16 %v804_v48, %v804_v48  ;;  %v805_v60 = vadd.f32 %v1425_v40, %v533_v50 }
  0xe8   :  { %1095 = vst.msk [vmem:[%s2225_s4 + $0x18] sm:$0xf] %vm1088_vm2, %v1292_v47  ;;  %v1293_v59 = vpack.c.bf16 %v775_v49, %v775_v49  ;;  %1127 = vst.msk [vmem:[%s2225_s4 + $0x98] sm:$0xf] %vm1088_vm2, %v1324_v53  ;;  %v1325_v62 = vpack.c.bf16 %v807_v55, %v807_v55  ;;  %v1433_v20 = vunpack.c.h.bf16 %v1497_v57  ;;  %v1380_v42 = vunpack.c.l.bf16 %v1484_v26 }
  0xe9   :  { %1093 = vst.msk [vmem:[%s2225_s4 + $0x10] sm:$0xf] %vm1088_vm2, %v1290_v54  ;;  %v1291_v63 = vpack.c.bf16 %v773_v56, %v773_v56  ;;  %v1554_v0 = vpop.f32.mrb[8].mxu0  ;;  %1125 = vst.msk [vmem:[%s2225_s4 + $0x90] sm:$0xf] %vm1088_vm2, %v1322_v58  ;;  %v1323_v3 = vpack.c.bf16 %v805_v60, %v805_v60  ;;  %v1586_v5 = vpop.f32.mrb[8].mxu1  ;;  %v1444_v46 = vunpack.c.l.bf16 %v1500_v31  ;;  %v1376_v47 = vunpack.c.l.bf16 %v1483_v32 }
  0xea   :  { %1096 = vst.msk [vmem:[%s2225_s4 + $0x1c] sm:$0xf] %vm1088_vm2, %v1293_v59  ;;  %v426_v4 = vadd.f32 %v1554_v0, %v1812_v37  ;;  %v417_v6 = vpop.f32.mrb[9].mxu0  ;;  %1128 = vst.msk [vmem:[%s2225_s4 + $0x9c] sm:$0xf] %vm1088_vm2, %v1325_v62  ;;  %v554_v9 = vadd.f32 %v1586_v5, %v1812_v37  ;;  %v545_v11 = vpop.f32.mrb[9].mxu1  ;;  %v1440_v52 = vunpack.c.l.bf16 %v1499_v38  ;;  %v1381_v53 = vunpack.c.h.bf16 %v1484_v26 }
  0xeb   :  { %1094 = vst.msk [vmem:[%s2225_s4 + $0x14] sm:$0xf] %vm1088_vm2, %v1291_v63  ;;  %v418_v10 = vadd.f32 %v1812_v37, %v417_v6  ;;  %v1555_v12 = vpop.f32.mrb[10].mxu0  ;;  %1126 = vst.msk [vmem:[%s2225_s4 + $0x94] sm:$0xf] %vm1088_vm2, %v1323_v3  ;;  %v546_v16 = vadd.f32 %v1812_v37, %v545_v11  ;;  %v1587_v18 = vpop.f32.mrb[10].mxu1  ;;  %v1445_v58 = vunpack.c.h.bf16 %v1500_v31  ;;  %v1377_v59 = vunpack.c.h.bf16 %v1483_v32 }
  0xec   :  { %v778_v15 = vadd.f32 %v1372_v61, %v426_v4  ;;  %v429_v17 = vadd.f32 %v1555_v12, %v1812_v37  ;;  %v420_v19 = vpop.f32.mrb[11].mxu0  ;;  %v810_v21 = vadd.f32 %v1436_v1, %v554_v9  ;;  %v557_v23 = vadd.f32 %v1587_v18, %v1812_v37  ;;  %v548_v25 = vpop.f32.mrb[11].mxu1  ;;  %v1502_v12 = vld [vmem:[%s2223_s3 + $0xc8] sm:$0xff]   ;;  %v1501_v18 = vld [vmem:[%s2223_s3 + $0xc0] sm:$0xff]  }
  0xed   :  { %v776_v22 = vadd.f32 %v1368_v2, %v418_v10  ;;  %v421_v24 = vadd.f32 %v1812_v37, %v420_v19  ;;  %v808_v28 = vadd.f32 %v1432_v7, %v546_v16  ;;  %v549_v30 = vadd.f32 %v1812_v37, %v548_v25  ;;  %v1486_v7 = vld [vmem:[%s2223_s3 + $0x48] sm:$0xff]  }
  0xee   :  { %v1296_v27 = vpack.c.bf16 %v778_v15, %v778_v15  ;;  %v779_v29 = vadd.f32 %v1373_v8, %v429_v17  ;;  %v1328_v33 = vpack.c.bf16 %v810_v21, %v810_v21  ;;  %v811_v35 = vadd.f32 %v1437_v13, %v557_v23  ;;  %v1485_v13 = vld [vmem:[%s2223_s3 + $0x40] sm:$0xff]  }
  0xef   :  { %v1294_v34 = vpack.c.bf16 %v776_v22, %v776_v22  ;;  %v777_v36 = vadd.f32 %v1369_v14, %v421_v24  ;;  %v1326_v39 = vpack.c.bf16 %v808_v28, %v808_v28  ;;  %v809_v41 = vadd.f32 %v1433_v20, %v549_v30 }
  0xf0   :  { %1099 = vst.msk [vmem:[%s2225_s4 + $0x28] sm:$0xf] %vm1088_vm2, %v1296_v27  ;;  %v1297_v40 = vpack.c.bf16 %v779_v29, %v779_v29  ;;  %1131 = vst.msk [vmem:[%s2225_s4 + $0xa8] sm:$0xf] %vm1088_vm2, %v1328_v33  ;;  %v1329_v43 = vpack.c.bf16 %v811_v35, %v811_v35  ;;  %v1441_v1 = vunpack.c.h.bf16 %v1499_v38  ;;  %v1388_v22 = vunpack.c.l.bf16 %v1486_v7 }
  0xf1   :  { %1097 = vst.msk [vmem:[%s2225_s4 + $0x20] sm:$0xf] %vm1088_vm2, %v1294_v34  ;;  %v1295_v44 = vpack.c.bf16 %v777_v36, %v777_v36  ;;  %v1558_v45 = vpop.f32.mrb[12].mxu0  ;;  %1129 = vst.msk [vmem:[%s2225_s4 + $0xa0] sm:$0xf] %vm1088_vm2, %v1326_v39  ;;  %v1327_v48 = vpack.c.bf16 %v809_v41, %v809_v41  ;;  %v1590_v50 = vpop.f32.mrb[12].mxu1  ;;  %v1452_v26 = vunpack.c.l.bf16 %v1502_v12  ;;  %v1384_v27 = vunpack.c.l.bf16 %v1485_v13 }
  0xf2   :  { %1100 = vst.msk [vmem:[%s2225_s4 + $0x2c] sm:$0xf] %vm1088_vm2, %v1297_v40  ;;  %v442_v49 = vadd.f32 %v1558_v45, %v1812_v37  ;;  %v433_v51 = vpop.f32.mrb[13].mxu0  ;;  %1132 = vst.msk [vmem:[%s2225_s4 + $0xac] sm:$0xf] %vm1088_vm2, %v1329_v43  ;;  %v570_v54 = vadd.f32 %v1590_v50, %v1812_v37  ;;  %v561_v56 = vpop.f32.mrb[13].mxu1  ;;  %v1448_v32 = vunpack.c.l.bf16 %v1501_v18  ;;  %v1389_v33 = vunpack.c.h.bf16 %v1486_v7 }
  0xf3   :  { %1098 = vst.msk [vmem:[%s2225_s4 + $0x24] sm:$0xf] %vm1088_vm2, %v1295_v44  ;;  %v434_v55 = vadd.f32 %v1812_v37, %v433_v51  ;;  %v1559_v57 = vpop.f32.mrb[14].mxu0  ;;  %1130 = vst.msk [vmem:[%s2225_s4 + $0xa4] sm:$0xf] %vm1088_vm2, %v1327_v48  ;;  %v562_v61 = vadd.f32 %v1812_v37, %v561_v56  ;;  %v1591_v63 = vpop.f32.mrb[14].mxu1  ;;  %v1453_v39 = vunpack.c.h.bf16 %v1502_v12  ;;  %v1385_v40 = vunpack.c.h.bf16 %v1485_v13 }
  0xf4   :  { %v782_v60 = vadd.f32 %v1380_v42, %v442_v49  ;;  %v445_v62 = vadd.f32 %v1559_v57, %v1812_v37  ;;  %v436_v0 = vpop.f32.mrb[15].mxu0  ;;  %v814_v2 = vadd.f32 %v1444_v46, %v570_v54  ;;  %v573_v4 = vadd.f32 %v1591_v63, %v1812_v37  ;;  %v564_v6 = vpop.f32.mrb[15].mxu1  ;;  %v1504_v57 = vld [vmem:[%s2223_s3 + $0xd8] sm:$0xff]   ;;  %v1503_v63 = vld [vmem:[%s2223_s3 + $0xd0] sm:$0xff]  }
  0xf5   :  { %v780_v3 = vadd.f32 %v1376_v47, %v434_v55  ;;  %v437_v5 = vadd.f32 %v1812_v37, %v436_v0  ;;  %v812_v9 = vadd.f32 %v1440_v52, %v562_v61  ;;  %v565_v11 = vadd.f32 %v1812_v37, %v564_v6  ;;  %v1488_v52 = vld [vmem:[%s2223_s3 + $0x58] sm:$0xff]  }
  0xf6   :  { %v1300_v8 = vpack.c.bf16 %v782_v60, %v782_v60  ;;  %v783_v10 = vadd.f32 %v1381_v53, %v445_v62  ;;  %v1332_v14 = vpack.c.bf16 %v814_v2, %v814_v2  ;;  %v815_v16 = vadd.f32 %v1445_v58, %v573_v4  ;;  %v1487_v58 = vld [vmem:[%s2223_s3 + $0x50] sm:$0xff]  }
  0xf7   :  { %v1298_v15 = vpack.c.bf16 %v780_v3, %v780_v3  ;;  %v781_v17 = vadd.f32 %v1377_v59, %v437_v5  ;;  %v1330_v19 = vpack.c.bf16 %v812_v9, %v812_v9  ;;  %v813_v21 = vadd.f32 %v1441_v1, %v565_v11 }
  0xf8   :  { %1103 = vst.msk [vmem:[%s2225_s4 + $0x38] sm:$0xf] %vm1088_vm2, %v1300_v8  ;;  %v1301_v20 = vpack.c.bf16 %v783_v10, %v783_v10  ;;  %1135 = vst.msk [vmem:[%s2225_s4 + $0xb8] sm:$0xf] %vm1088_vm2, %v1332_v14  ;;  %v1333_v23 = vpack.c.bf16 %v815_v16, %v815_v16  ;;  %v1449_v46 = vunpack.c.h.bf16 %v1501_v18  ;;  %v1396_v3 = vunpack.c.l.bf16 %v1488_v52 }
  0xf9   :  { %1101 = vst.msk [vmem:[%s2225_s4 + $0x30] sm:$0xf] %vm1088_vm2, %v1298_v15  ;;  %v1299_v24 = vpack.c.bf16 %v781_v17, %v781_v17  ;;  %v1562_v25 = vpop.f32.mrb[16].mxu0  ;;  %1133 = vst.msk [vmem:[%s2225_s4 + $0xb0] sm:$0xf] %vm1088_vm2, %v1330_v19  ;;  %v1331_v28 = vpack.c.bf16 %v813_v21, %v813_v21  ;;  %v1594_v30 = vpop.f32.mrb[16].mxu1  ;;  %v1460_v7 = vunpack.c.l.bf16 %v1504_v57  ;;  %v1392_v8 = vunpack.c.l.bf16 %v1487_v58 }
  0xfa   :  { %1104 = vst.msk [vmem:[%s2225_s4 + $0x3c] sm:$0xf] %vm1088_vm2, %v1301_v20  ;;  %v458_v29 = vadd.f32 %v1562_v25, %v1812_v37  ;;  %v449_v31 = vpop.f32.mrb[17].mxu0  ;;  %1136 = vst.msk [vmem:[%s2225_s4 + $0xbc] sm:$0xf] %vm1088_vm2, %v1333_v23  ;;  %v586_v34 = vadd.f32 %v1594_v30, %v1812_v37  ;;  %v577_v36 = vpop.f32.mrb[17].mxu1  ;;  %v1456_v13 = vunpack.c.l.bf16 %v1503_v63  ;;  %v1397_v14 = vunpack.c.h.bf16 %v1488_v52 }
  0xfb   :  { %1102 = vst.msk [vmem:[%s2225_s4 + $0x34] sm:$0xf] %vm1088_vm2, %v1299_v24  ;;  %v450_v35 = vadd.f32 %v1812_v37, %v449_v31  ;;  %v1563_v38 = vpop.f32.mrb[18].mxu0  ;;  %1134 = vst.msk [vmem:[%s2225_s4 + $0xb4] sm:$0xf] %vm1088_vm2, %v1331_v28  ;;  %v578_v42 = vadd.f32 %v1812_v37, %v577_v36  ;;  %v1595_v44 = vpop.f32.mrb[18].mxu1  ;;  %v1461_v19 = vunpack.c.h.bf16 %v1504_v57  ;;  %v1393_v20 = vunpack.c.h.bf16 %v1487_v58 }
  0xfc   :  { %v786_v41 = vadd.f32 %v1388_v22, %v458_v29  ;;  %v461_v43 = vadd.f32 %v1563_v38, %v1812_v37  ;;  %v452_v45 = vpop.f32.mrb[19].mxu0  ;;  %v818_v47 = vadd.f32 %v1452_v26, %v586_v34  ;;  %v589_v49 = vadd.f32 %v1595_v44, %v1812_v37  ;;  %v580_v51 = vpop.f32.mrb[19].mxu1  ;;  %v1506_v38 = vld [vmem:[%s2223_s3 + $0xe8] sm:$0xff]   ;;  %v1505_v44 = vld [vmem:[%s2223_s3 + $0xe0] sm:$0xff]  }
  0xfd   :  { %v784_v48 = vadd.f32 %v1384_v27, %v450_v35  ;;  %v453_v50 = vadd.f32 %v1812_v37, %v452_v45  ;;  %v816_v54 = vadd.f32 %v1448_v32, %v578_v42  ;;  %v581_v56 = vadd.f32 %v1812_v37, %v580_v51  ;;  %v1490_v32 = vld [vmem:[%s2223_s3 + $0x68] sm:$0xff]  }
  0xfe   :  { %v1304_v53 = vpack.c.bf16 %v786_v41, %v786_v41  ;;  %v787_v55 = vadd.f32 %v1389_v33, %v461_v43  ;;  %v1336_v59 = vpack.c.bf16 %v818_v47, %v818_v47  ;;  %v819_v61 = vadd.f32 %v1453_v39, %v589_v49  ;;  %v1489_v39 = vld [vmem:[%s2223_s3 + $0x60] sm:$0xff]  }
  0xff   :  { %v1302_v60 = vpack.c.bf16 %v784_v48, %v784_v48  ;;  %v785_v62 = vadd.f32 %v1385_v40, %v453_v50  ;;  %v1334_v0 = vpack.c.bf16 %v816_v54, %v816_v54  ;;  %v817_v2 = vadd.f32 %v1449_v46, %v581_v56 }
 0x100   :  { %1107 = vst.msk [vmem:[%s2225_s4 + $0x48] sm:$0xf] %vm1088_vm2, %v1304_v53  ;;  %v1305_v1 = vpack.c.bf16 %v787_v55, %v787_v55  ;;  %1139 = vst.msk [vmem:[%s2225_s4 + $0xc8] sm:$0xf] %vm1088_vm2, %v1336_v59  ;;  %v1337_v4 = vpack.c.bf16 %v819_v61, %v819_v61  ;;  %v1457_v26 = vunpack.c.h.bf16 %v1503_v63  ;;  %v1404_v48 = vunpack.c.l.bf16 %v1490_v32 }
 0x101   :  { %1105 = vst.msk [vmem:[%s2225_s4 + $0x40] sm:$0xf] %vm1088_vm2, %v1302_v60  ;;  %v1303_v5 = vpack.c.bf16 %v785_v62, %v785_v62  ;;  %v1566_v6 = vpop.f32.mrb[20].mxu0  ;;  %1137 = vst.msk [vmem:[%s2225_s4 + $0xc0] sm:$0xf] %vm1088_vm2, %v1334_v0  ;;  %v1335_v9 = vpack.c.bf16 %v817_v2, %v817_v2  ;;  %v1598_v11 = vpop.f32.mrb[20].mxu1  ;;  %v1468_v52 = vunpack.c.l.bf16 %v1506_v38  ;;  %v1400_v53 = vunpack.c.l.bf16 %v1489_v39 }
 0x102   :  { %1108 = vst.msk [vmem:[%s2225_s4 + $0x4c] sm:$0xf] %vm1088_vm2, %v1305_v1  ;;  %v474_v10 = vadd.f32 %v1566_v6, %v1812_v37  ;;  %v465_v12 = vpop.f32.mrb[21].mxu0  ;;  %1140 = vst.msk [vmem:[%s2225_s4 + $0xcc] sm:$0xf] %vm1088_vm2, %v1337_v4  ;;  %v602_v15 = vadd.f32 %v1598_v11, %v1812_v37  ;;  %v593_v17 = vpop.f32.mrb[21].mxu1  ;;  %v1464_v58 = vunpack.c.l.bf16 %v1505_v44  ;;  %v1405_v59 = vunpack.c.h.bf16 %v1490_v32 }
 0x103   :  { %1106 = vst.msk [vmem:[%s2225_s4 + $0x44] sm:$0xf] %vm1088_vm2, %v1303_v5  ;;  %v466_v16 = vadd.f32 %v1812_v37, %v465_v12  ;;  %v1567_v18 = vpop.f32.mrb[22].mxu0  ;;  %1138 = vst.msk [vmem:[%s2225_s4 + $0xc4] sm:$0xf] %vm1088_vm2, %v1335_v9  ;;  %v594_v22 = vadd.f32 %v1812_v37, %v593_v17  ;;  %v1599_v24 = vpop.f32.mrb[22].mxu1  ;;  %v1469_v0 = vunpack.c.h.bf16 %v1506_v38  ;;  %v1401_v1 = vunpack.c.h.bf16 %v1489_v39 }
 0x104   :  { %v790_v21 = vadd.f32 %v1396_v3, %v474_v10  ;;  %v477_v23 = vadd.f32 %v1567_v18, %v1812_v37  ;;  %v468_v25 = vpop.f32.mrb[23].mxu0  ;;  %v822_v27 = vadd.f32 %v1460_v7, %v602_v15  ;;  %v605_v29 = vadd.f32 %v1599_v24, %v1812_v37  ;;  %v596_v31 = vpop.f32.mrb[23].mxu1  ;;  %v1508_v18 = vld [vmem:[%s2223_s3 + $0xf8] sm:$0xff]   ;;  %v1507_v24 = vld [vmem:[%s2223_s3 + $0xf0] sm:$0xff]  }
 0x105   :  { %v788_v28 = vadd.f32 %v1392_v8, %v466_v16  ;;  %v469_v30 = vadd.f32 %v1812_v37, %v468_v25  ;;  %v820_v34 = vadd.f32 %v1456_v13, %v594_v22  ;;  %v597_v36 = vadd.f32 %v1812_v37, %v596_v31  ;;  %v1492_v13 = vld [vmem:[%s2223_s3 + $0x78] sm:$0xff]  }
 0x106   :  { %v1308_v33 = vpack.c.bf16 %v790_v21, %v790_v21  ;;  %v791_v35 = vadd.f32 %v1397_v14, %v477_v23  ;;  %v1340_v40 = vpack.c.bf16 %v822_v27, %v822_v27  ;;  %v823_v42 = vadd.f32 %v1461_v19, %v605_v29  ;;  %v1491_v19 = vld [vmem:[%s2223_s3 + $0x70] sm:$0xff]  }
 0x107   :  { %v1306_v41 = vpack.c.bf16 %v788_v28, %v788_v28  ;;  %v789_v43 = vadd.f32 %v1393_v20, %v469_v30  ;;  %v1338_v45 = vpack.c.bf16 %v820_v34, %v820_v34  ;;  %v821_v47 = vadd.f32 %v1457_v26, %v597_v36 }
 0x108   :  { %1111 = vst.msk [vmem:[%s2225_s4 + $0x58] sm:$0xf] %vm1088_vm2, %v1308_v33  ;;  %v1309_v46 = vpack.c.bf16 %v791_v35, %v791_v35  ;;  %1143 = vst.msk [vmem:[%s2225_s4 + $0xd8] sm:$0xf] %vm1088_vm2, %v1340_v40  ;;  %v1341_v49 = vpack.c.bf16 %v823_v42, %v823_v42  ;;  %v1465_v7 = vunpack.c.h.bf16 %v1505_v44  ;;  %v1412_v28 = vunpack.c.l.bf16 %v1492_v13 }
 0x109   :  { %1109 = vst.msk [vmem:[%s2225_s4 + $0x50] sm:$0xf] %vm1088_vm2, %v1306_v41  ;;  %v1307_v50 = vpack.c.bf16 %v789_v43, %v789_v43  ;;  %v1570_v51 = vpop.f32.mrb[24].mxu0  ;;  %1141 = vst.msk [vmem:[%s2225_s4 + $0xd0] sm:$0xf] %vm1088_vm2, %v1338_v45  ;;  %v1339_v54 = vpack.c.bf16 %v821_v47, %v821_v47  ;;  %v1602_v56 = vpop.f32.mrb[24].mxu1  ;;  %v1476_v32 = vunpack.c.l.bf16 %v1508_v18  ;;  %v1408_v33 = vunpack.c.l.bf16 %v1491_v19 }
 0x10a   :  { %1112 = vst.msk [vmem:[%s2225_s4 + $0x5c] sm:$0xf] %vm1088_vm2, %v1309_v46  ;;  %v490_v55 = vadd.f32 %v1570_v51, %v1812_v37  ;;  %v481_v57 = vpop.f32.mrb[25].mxu0  ;;  %1144 = vst.msk [vmem:[%s2225_s4 + $0xdc] sm:$0xf] %vm1088_vm2, %v1341_v49  ;;  %v618_v60 = vadd.f32 %v1602_v56, %v1812_v37  ;;  %v609_v62 = vpop.f32.mrb[25].mxu1  ;;  %v1472_v39 = vunpack.c.l.bf16 %v1507_v24  ;;  %v1413_v40 = vunpack.c.h.bf16 %v1492_v13 }
 0x10b   :  { %1110 = vst.msk [vmem:[%s2225_s4 + $0x54] sm:$0xf] %vm1088_vm2, %v1307_v50  ;;  %v482_v61 = vadd.f32 %v1812_v37, %v481_v57  ;;  %v1571_v63 = vpop.f32.mrb[26].mxu0  ;;  %1142 = vst.msk [vmem:[%s2225_s4 + $0xd4] sm:$0xf] %vm1088_vm2, %v1339_v54  ;;  %v610_v3 = vadd.f32 %v1812_v37, %v609_v62  ;;  %v1603_v5 = vpop.f32.mrb[26].mxu1  ;;  %v1477_v45 = vunpack.c.h.bf16 %v1508_v18  ;;  %v1409_v46 = vunpack.c.h.bf16 %v1491_v19 }
 0x10c   :  { %v794_v2 = vadd.f32 %v1404_v48, %v490_v55  ;;  %v493_v4 = vadd.f32 %v1571_v63, %v1812_v37  ;;  %v484_v6 = vpop.f32.mrb[27].mxu0  ;;  %v826_v8 = vadd.f32 %v1468_v52, %v618_v60  ;;  %v621_v10 = vadd.f32 %v1603_v5, %v1812_v37  ;;  %v612_v12 = vpop.f32.mrb[27].mxu1 }
 0x10d   :  { %v792_v9 = vadd.f32 %v1400_v53, %v482_v61  ;;  %v485_v11 = vadd.f32 %v1812_v37, %v484_v6  ;;  %v824_v15 = vadd.f32 %v1464_v58, %v610_v3  ;;  %v613_v17 = vadd.f32 %v1812_v37, %v612_v12 }
 0x10e   :  { %v1312_v14 = vpack.c.bf16 %v794_v2, %v794_v2  ;;  %v795_v16 = vadd.f32 %v1405_v59, %v493_v4  ;;  %v1344_v20 = vpack.c.bf16 %v826_v8, %v826_v8  ;;  %v827_v22 = vadd.f32 %v1469_v0, %v621_v10 }
 0x10f   :  { %v1310_v21 = vpack.c.bf16 %v792_v9, %v792_v9  ;;  %v793_v23 = vadd.f32 %v1401_v1, %v485_v11  ;;  %v1342_v25 = vpack.c.bf16 %v824_v15, %v824_v15  ;;  %v825_v27 = vadd.f32 %v1465_v7, %v613_v17 }
 0x110   :  { %1115 = vst.msk [vmem:[%s2225_s4 + $0x68] sm:$0xf] %vm1088_vm2, %v1312_v14  ;;  %v1313_v26 = vpack.c.bf16 %v795_v16, %v795_v16  ;;  %1147 = vst.msk [vmem:[%s2225_s4 + $0xe8] sm:$0xf] %vm1088_vm2, %v1344_v20  ;;  %v1345_v29 = vpack.c.bf16 %v827_v22, %v827_v22  ;;  %v1473_v52 = vunpack.c.h.bf16 %v1507_v24 }
 0x111   :  { %1113 = vst.msk [vmem:[%s2225_s4 + $0x60] sm:$0xf] %vm1088_vm2, %v1310_v21  ;;  %v1311_v30 = vpack.c.bf16 %v793_v23, %v793_v23  ;;  %v1574_v31 = vpop.f32.mrb[28].mxu0  ;;  %1145 = vst.msk [vmem:[%s2225_s4 + $0xe0] sm:$0xf] %vm1088_vm2, %v1342_v25  ;;  %v1343_v34 = vpack.c.bf16 %v825_v27, %v825_v27  ;;  %v1606_v36 = vpop.f32.mrb[28].mxu1 }
 0x112   :  { %1116 = vst.msk [vmem:[%s2225_s4 + $0x6c] sm:$0xf] %vm1088_vm2, %v1313_v26  ;;  %v506_v35 = vadd.f32 %v1574_v31, %v1812_v37  ;;  %v497_v38 = vpop.f32.mrb[29].mxu0  ;;  %1148 = vst.msk [vmem:[%s2225_s4 + $0xec] sm:$0xf] %vm1088_vm2, %v1345_v29  ;;  %v634_v41 = vadd.f32 %v1606_v36, %v1812_v37  ;;  %v625_v43 = vpop.f32.mrb[29].mxu1 }
 0x113   :  { %1114 = vst.msk [vmem:[%s2225_s4 + $0x64] sm:$0xf] %vm1088_vm2, %v1311_v30  ;;  %v498_v42 = vadd.f32 %v1812_v37, %v497_v38  ;;  %v1575_v44 = vpop.f32.mrb[30].mxu0  ;;  %1146 = vst.msk [vmem:[%s2225_s4 + $0xe4] sm:$0xf] %vm1088_vm2, %v1343_v34  ;;  %v626_v48 = vadd.f32 %v1812_v37, %v625_v43  ;;  %v1607_v50 = vpop.f32.mrb[30].mxu1 }
 0x114   :  { %v798_v47 = vadd.f32 %v1412_v28, %v506_v35  ;;  %v509_v49 = vadd.f32 %v1575_v44, %v1812_v37  ;;  %v500_v51 = vpop.f32.mrb[31].mxu0  ;;  %v830_v53 = vadd.f32 %v1476_v32, %v634_v41  ;;  %v637_v55 = vadd.f32 %v1607_v50, %v1812_v37  ;;  %v628_v57 = vpop.f32.mrb[31].mxu1 }
 0x115   :  { %v796_v54 = vadd.f32 %v1408_v33, %v498_v42  ;;  %v501_v56 = vadd.f32 %v1812_v37, %v500_v51  ;;  %v828_v59 = vadd.f32 %v1472_v39, %v626_v48  ;;  %v629_v61 = vadd.f32 %v1812_v37, %v628_v57 }
 0x116   :  { %v1316_v58 = vpack.c.bf16 %v798_v47, %v798_v47  ;;  %v799_v60 = vadd.f32 %v1413_v40, %v509_v49  ;;  %v1348_v62 = vpack.c.bf16 %v830_v53, %v830_v53  ;;  %v831_v0 = vadd.f32 %v1477_v45, %v637_v55 }
 0x117   :  { %v1314_v63 = vpack.c.bf16 %v796_v54, %v796_v54  ;;  %v797_v1 = vadd.f32 %v1409_v46, %v501_v56  ;;  %v1346_v2 = vpack.c.bf16 %v828_v59, %v828_v59  ;;  %v829_v4 = vadd.f32 %v1473_v52, %v629_v61 }
 0x118   :  { %1119 = vst.msk [vmem:[%s2225_s4 + $0x78] sm:$0xf] %vm1088_vm2, %v1316_v58  ;;  %v1317_v3 = vpack.c.bf16 %v799_v60, %v799_v60  ;;  %1151 = vst.msk [vmem:[%s2225_s4 + $0xf8] sm:$0xf] %vm1088_vm2, %v1348_v62  ;;  %v1349_v37 = vpack.c.bf16 %v831_v0, %v831_v0 }
 0x119   :  { %1117 = vst.msk [vmem:[%s2225_s4 + $0x70] sm:$0xf] %vm1088_vm2, %v1314_v63  ;;  %v1315_v5 = vpack.c.bf16 %v797_v1, %v797_v1  ;;  %1149 = vst.msk [vmem:[%s2225_s4 + $0xf0] sm:$0xf] %vm1088_vm2, %v1346_v2  ;;  %v1347_v6 = vpack.c.bf16 %v829_v4, %v829_v4 }
 0x11a   :  { %1120 = vst.msk [vmem:[%s2225_s4 + $0x7c] sm:$0xf] %vm1088_vm2, %v1317_v3  ;;  %1152 = vst.msk [vmem:[%s2225_s4 + $0xfc] sm:$0xf] %vm1088_vm2, %v1349_v37 }
 0x11b   :  { %1118 = vst.msk [vmem:[%s2225_s4 + $0x74] sm:$0xf] %vm1088_vm2, %v1315_v5  ;;  %1150 = vst.msk [vmem:[%s2225_s4 + $0xf4] sm:$0xf] %vm1088_vm2, %v1347_v6 }

</bundles_post_ra>
